<compile_context>
chip_gen: v7x
topology: tpu7x:2x2x1
jax: 0.10.0
libtpu: 0.0.40
codegen_flags: <defaults>
</compile_context>

<pallas_src>
import jax
import jax.numpy as jnp
from jax.experimental import pallas as pl
from jax.experimental.pallas import tpu as pltpu  # noqa: F401  (kept for TPU-specific tuning hooks)

# ---------------- config consistent with the module's ViT usage ----------------
EMBED_DIM = 64
NUM_HEADS = 4
HEAD_DIM = EMBED_DIM // NUM_HEADS          # 16
BATCH = 2
SEQ_LEN = 33                               # num_patches + (num_patches + 1) in the ViT


# ------------------------------ kernel ------------------------------
def _mha_kernel(q_ref, k_ref, v_ref,
                wq_ref, bq_ref, wk_ref, bk_ref, wv_ref, bv_ref,
                wo_ref, bo_ref, mask_ref,
                o_ref):
    # Whole problem lives in VMEM; single invocation (no grid).
    xq = q_ref[...]                                  # (B*S, D) = (66, 64)
    xk = k_ref[...]
    xv = v_ref[...]

    # Fused full-width projections: block-diagonal kron(I_heads, W) == the
    # per-head shared Linear(head_dim, head_dim) of the reference module.
    # The 1/sqrt(head_dim) scale is pre-folded into wq / bq.
    q = jnp.dot(xq, wq_ref[...], preferred_element_type=jnp.float32) + bq_ref[...]
    k = jnp.dot(xk, wk_ref[...], preferred_element_type=jnp.float32) + bk_ref[...]
    v = jnp.dot(xv, wv_ref[...], preferred_element_type=jnp.float32) + bv_ref[...]

    mask = mask_ref[...]                             # (66, 66): 0 in-batch, -1e30 cross-batch

    # Head axis survives only for the (B*S, B*S) score / PV matmuls; batch is
    # handled by the additive block mask (cross-batch probs underflow to 0).
    head_outs = []
    for h in range(NUM_HEADS):
        lo = h * HEAD_DIM
        hi = lo + HEAD_DIM
        qh = q[:, lo:hi]                             # (66, 16)
        kh = k[:, lo:hi]
        vh = v[:, lo:hi]
        s = jax.lax.dot_general(
            qh, kh, (((1,), (1,)), ((), ())), preferred_element_type=jnp.float32
        )                                            # (66, 66), already scaled
        s = s + mask
        m = jnp.max(s, axis=-1, keepdims=True)
        e = jnp.exp(s - m)
        inv = pl.reciprocal(jnp.sum(e, axis=-1, keepdims=True), approx=True)
        p = e * inv
        head_outs.append(jnp.dot(p, vh, preferred_element_type=jnp.float32))

    attn = jnp.concatenate(head_outs, axis=-1)       # (66, 64)
    o_ref[...] = (
        jnp.dot(attn, wo_ref[...], preferred_element_type=jnp.float32) + bo_ref[...]
    )


# ------------------------------ one-time weight / mask prep ------------------------------
def fold_params(p):
    """Fold the shared per-head Linears into block-diagonal full-width weights.

    Called ONCE at model init (not per forward).  Off-diagonal blocks are
    exact zeros, so this is bit-exact w.r.t. the reference per-head Linear.
    The 1/sqrt(head_dim) score scale is folded into wq and bq.
    """
    eye = jnp.eye(NUM_HEADS, dtype=jnp.float32)
    scale = jnp.float32(1.0 / (HEAD_DIM ** 0.5))
    return {
        "wq": jnp.kron(eye, p["qw"] * scale),
        "bq": jnp.tile(p["qb"] * scale, (1, NUM_HEADS)),
        "wk": jnp.kron(eye, p["kw"]),
        "bk": jnp.tile(p["kb"], (1, NUM_HEADS)),
        "wv": jnp.kron(eye, p["vw"]),
        "bv": jnp.tile(p["vb"], (1, NUM_HEADS)),
        "wo": p["ow"],
        "bo": p["ob"],
    }


def make_batch_mask(batch, seq_len):
    """Additive block mask over (B*S, B*S): 0 within a batch, -1e30 across."""
    ids = jnp.repeat(jnp.arange(batch, dtype=jnp.int32), seq_len)
    same = ids[:, None] == ids[None, :]
    return jnp.where(same, jnp.float32(0.0), jnp.float32(-1e30))


# ------------------------------ wrapper ------------------------------
def mha_forward(query, key, value, folded, mask):
    B, S, D = query.shape
    n = B * S

    # Free view-reshapes: (B, S, D) -> (B*S, D); batch handled by the mask.
    q2 = query.reshape(n, D)
    k2 = key.reshape(n, D)
    v2 = value.reshape(n, D)

    args = (q2, k2, v2,
            folded["wq"], folded["bq"], folded["wk"], folded["bk"],
            folded["wv"], folded["bv"], folded["wo"], folded["bo"],
            mask)

    # Single invocation: every operand is one full block resident in VMEM.
    in_specs = [pl.BlockSpec(a.shape, lambda: (0, 0)) for a in args]

    out = pl.pallas_call(
        _mha_kernel,
        out_shape=jax.ShapeDtypeStruct((n, D), jnp.float32),
        in_specs=in_specs,
        out_specs=pl.BlockSpec((n, D), lambda: (0, 0)),
    )(*args)
    return out.reshape(B, S, D)


# ------------------------------ reference (pure JAX) ------------------------------
def mha_reference(query, key, value, p):
    B, S, D = query.shape

    def split(x):                                    # 'b s (h d) -> b h s d'
        return x.reshape(B, S, NUM_HEADS, HEAD_DIM).transpose(0, 2, 1, 3)

    q = split(query) @ p["qw"] + p["qb"]
    k = split(key) @ p["kw"] + p["kb"]
    v = split(value) @ p["vw"] + p["vb"]
    scores = jnp.einsum("bhsd,bhtd->bhst", q, k) / jnp.sqrt(jnp.float32(HEAD_DIM))
    attn = jax.nn.softmax(scores, axis=-1)
    out = jnp.einsum("bhst,bhtd->bhsd", attn, v)
    out = out.transpose(0, 2, 1, 3).reshape(B, S, D)  # 'b h s d -> b s (h d)'
    return out @ p["ow"] + p["ob"]


# ------------------------------ params ------------------------------
def init_params(key):
    ks = jax.random.split(key, 8)

    def nrm(k, shape, fan_in):
        return jax.random.normal(k, shape, jnp.float32) / jnp.sqrt(jnp.float32(fan_in))

    # Weights stored pre-transposed as (in, out); biases as (1, out).
    return {
        "qw": nrm(ks[0], (HEAD_DIM, HEAD_DIM), HEAD_DIM),
        "qb": nrm(ks[1], (1, HEAD_DIM), HEAD_DIM),
        "kw": nrm(ks[2], (HEAD_DIM, HEAD_DIM), HEAD_DIM),
        "kb": nrm(ks[3], (1, HEAD_DIM), HEAD_DIM),
        "vw": nrm(ks[4], (HEAD_DIM, HEAD_DIM), HEAD_DIM),
        "vb": nrm(ks[5], (1, HEAD_DIM), HEAD_DIM),
        "ow": nrm(ks[6], (EMBED_DIM, EMBED_DIM), EMBED_DIM),
        "ob": nrm(ks[7], (1, EMBED_DIM), EMBED_DIM),
    }


if __name__ == "__main__":
    params = init_params(jax.random.PRNGKey(1))

    # One-time prep (cached; not part of the per-call forward path).
    folded = jax.tree_util.tree_map(jnp.asarray, fold_params(params))
    mask = make_batch_mask(BATCH, SEQ_LEN)
    jax.block_until_ready((folded, mask))

    kq, kk, kv = jax.random.split(jax.random.PRNGKey(0), 3)
    query = jax.random.normal(kq, (BATCH, SEQ_LEN, EMBED_DIM), jnp.float32)
    key = jax.random.normal(kk, (BATCH, SEQ_LEN, EMBED_DIM), jnp.float32)
    value = jax.random.normal(kv, (BATCH, SEQ_LEN, EMBED_DIM), jnp.float32)

    fwd = jax.jit(mha_forward)
    out = fwd(query, key, value, folded, mask)
    jax.block_until_ready(out)

    assert out.shape == (BATCH, SEQ_LEN, EMBED_DIM)
    assert bool(jnp.all(jnp.isfinite(out)))

    ref = mha_reference(query, key, value, params)
    err = float(jnp.max(jnp.abs(out - ref)))
    assert err < 1e-2, f"mismatch vs reference: max abs err {err}"

    print("KERNEL_OK")
</pallas_src>

<mosaic_0001>
module attributes {stable_mosaic.version = 11 : i64} {
  func.func @_mha_kernel(%arg0: memref<66x64xf32, #tpu.memory_space<vmem>>, %arg1: memref<66x64xf32, #tpu.memory_space<vmem>>, %arg2: memref<66x64xf32, #tpu.memory_space<vmem>>, %arg3: memref<64x64xf32, #tpu.memory_space<vmem>>, %arg4: memref<1x64xf32, #tpu.memory_space<vmem>>, %arg5: memref<64x64xf32, #tpu.memory_space<vmem>>, %arg6: memref<1x64xf32, #tpu.memory_space<vmem>>, %arg7: memref<64x64xf32, #tpu.memory_space<vmem>>, %arg8: memref<1x64xf32, #tpu.memory_space<vmem>>, %arg9: memref<64x64xf32, #tpu.memory_space<vmem>>, %arg10: memref<1x64xf32, #tpu.memory_space<vmem>>, %arg11: memref<66x66xf32, #tpu.memory_space<vmem>>, %arg12: memref<66x64xf32, #tpu.memory_space<vmem>>) attributes {dimension_semantics = [], scalar_prefetch = 0 : i64, scratch_operands = 0 : i64, tpu.core_type = #tpu.core_type<tc>} {
    %c0 = arith.constant 0 : index
    %c0_0 = arith.constant 0 : index
    %0 = vector.load %arg0[%c0, %c0_0] : memref<66x64xf32, #tpu.memory_space<vmem>>, vector<66x64xf32>
    %c0_1 = arith.constant 0 : index
    %c0_2 = arith.constant 0 : index
    %1 = vector.load %arg1[%c0_1, %c0_2] : memref<66x64xf32, #tpu.memory_space<vmem>>, vector<66x64xf32>
    %c0_3 = arith.constant 0 : index
    %c0_4 = arith.constant 0 : index
    %2 = vector.load %arg2[%c0_3, %c0_4] : memref<66x64xf32, #tpu.memory_space<vmem>>, vector<66x64xf32>
    %c0_5 = arith.constant 0 : index
    %c0_6 = arith.constant 0 : index
    %3 = vector.load %arg3[%c0_5, %c0_6] : memref<64x64xf32, #tpu.memory_space<vmem>>, vector<64x64xf32>
    %cst = arith.constant dense<0.000000e+00> : vector<66x64xf32>
    %4 = tpu.matmul %0, %3, %cst {dimension_numbers = #tpu.dot_dimension_numbers<[1], [0], [0], [1], [0, 0, 1, 1], [], []>} : vector<66x64xf32>, vector<64x64xf32>, vector<66x64xf32> -> vector<66x64xf32>
    %c0_7 = arith.constant 0 : index
    %c0_8 = arith.constant 0 : index
    %5 = vector.load %arg4[%c0_7, %c0_8] : memref<1x64xf32, #tpu.memory_space<vmem>>, vector<1x64xf32>
    %6 = vector.broadcast %5 : vector<1x64xf32> to vector<66x64xf32>
    %7 = arith.addf %4, %6 : vector<66x64xf32>
    %c0_9 = arith.constant 0 : index
    %c0_10 = arith.constant 0 : index
    %8 = vector.load %arg5[%c0_9, %c0_10] : memref<64x64xf32, #tpu.memory_space<vmem>>, vector<64x64xf32>
    %cst_11 = arith.constant dense<0.000000e+00> : vector<66x64xf32>
    %9 = tpu.matmul %1, %8, %cst_11 {dimension_numbers = #tpu.dot_dimension_numbers<[1], [0], [0], [1], [0, 0, 1, 1], [], []>} : vector<66x64xf32>, vector<64x64xf32>, vector<66x64xf32> -> vector<66x64xf32>
    %c0_12 = arith.constant 0 : index
    %c0_13 = arith.constant 0 : index
    %10 = vector.load %arg6[%c0_12, %c0_13] : memref<1x64xf32, #tpu.memory_space<vmem>>, vector<1x64xf32>
    %11 = vector.broadcast %10 : vector<1x64xf32> to vector<66x64xf32>
    %12 = arith.addf %9, %11 : vector<66x64xf32>
    %c0_14 = arith.constant 0 : index
    %c0_15 = arith.constant 0 : index
    %13 = vector.load %arg7[%c0_14, %c0_15] : memref<64x64xf32, #tpu.memory_space<vmem>>, vector<64x64xf32>
    %cst_16 = arith.constant dense<0.000000e+00> : vector<66x64xf32>
    %14 = tpu.matmul %2, %13, %cst_16 {dimension_numbers = #tpu.dot_dimension_numbers<[1], [0], [0], [1], [0, 0, 1, 1], [], []>} : vector<66x64xf32>, vector<64x64xf32>, vector<66x64xf32> -> vector<66x64xf32>
    %c0_17 = arith.constant 0 : index
    %c0_18 = arith.constant 0 : index
    %15 = vector.load %arg8[%c0_17, %c0_18] : memref<1x64xf32, #tpu.memory_space<vmem>>, vector<1x64xf32>
    %16 = vector.broadcast %15 : vector<1x64xf32> to vector<66x64xf32>
    %17 = arith.addf %14, %16 : vector<66x64xf32>
    %c0_19 = arith.constant 0 : index
    %c0_20 = arith.constant 0 : index
    %18 = vector.load %arg11[%c0_19, %c0_20] : memref<66x66xf32, #tpu.memory_space<vmem>>, vector<66x66xf32>
    %19 = vector.extract_strided_slice %7 {offsets = [0, 0], sizes = [66, 16], strides = [1, 1]} : vector<66x64xf32> to vector<66x16xf32>
    %20 = vector.extract_strided_slice %12 {offsets = [0, 0], sizes = [66, 16], strides = [1, 1]} : vector<66x64xf32> to vector<66x16xf32>
    %21 = vector.extract_strided_slice %17 {offsets = [0, 0], sizes = [66, 16], strides = [1, 1]} : vector<66x64xf32> to vector<66x16xf32>
    %cst_21 = arith.constant dense<0.000000e+00> : vector<66x66xf32>
    %22 = tpu.matmul %19, %20, %cst_21 {dimension_numbers = #tpu.dot_dimension_numbers<[1], [1], [0], [0], [0, 0, 1, 0], [], []>} : vector<66x16xf32>, vector<66x16xf32>, vector<66x66xf32> -> vector<66x66xf32>
    %23 = arith.addf %22, %18 : vector<66x66xf32>
    %cst_22 = arith.constant dense<0xFF800000> : vector<66xf32>
    %24 = vector.multi_reduction <maximumf>, %23, %cst_22 [1] : vector<66x66xf32> to vector<66xf32>
    %25 = vector.shape_cast %24 : vector<66xf32> to vector<66x1xf32>
    %26 = vector.broadcast %25 : vector<66x1xf32> to vector<66x66xf32>
    %27 = arith.subf %23, %26 : vector<66x66xf32>
    %28 = math.exp %27 : vector<66x66xf32>
    %cst_23 = arith.constant dense<0.000000e+00> : vector<66xf32>
    %29 = vector.multi_reduction <add>, %28, %cst_23 [1] : vector<66x66xf32> to vector<66xf32>
    %30 = vector.shape_cast %29 : vector<66xf32> to vector<66x1xf32>
    %31 = tpu.reciprocal %30 {approx = true} : vector<66x1xf32> -> vector<66x1xf32>
    %32 = vector.broadcast %31 : vector<66x1xf32> to vector<66x66xf32>
    %33 = arith.mulf %28, %32 : vector<66x66xf32>
    %cst_24 = arith.constant dense<0.000000e+00> : vector<66x16xf32>
    %34 = tpu.matmul %33, %21, %cst_24 {dimension_numbers = #tpu.dot_dimension_numbers<[1], [0], [0], [1], [0, 0, 1, 1], [], []>} : vector<66x66xf32>, vector<66x16xf32>, vector<66x16xf32> -> vector<66x16xf32>
    %35 = vector.extract_strided_slice %7 {offsets = [0, 16], sizes = [66, 16], strides = [1, 1]} : vector<66x64xf32> to vector<66x16xf32>
    %36 = vector.extract_strided_slice %12 {offsets = [0, 16], sizes = [66, 16], strides = [1, 1]} : vector<66x64xf32> to vector<66x16xf32>
    %37 = vector.extract_strided_slice %17 {offsets = [0, 16], sizes = [66, 16], strides = [1, 1]} : vector<66x64xf32> to vector<66x16xf32>
    %cst_25 = arith.constant dense<0.000000e+00> : vector<66x66xf32>
    %38 = tpu.matmul %35, %36, %cst_25 {dimension_numbers = #tpu.dot_dimension_numbers<[1], [1], [0], [0], [0, 0, 1, 0], [], []>} : vector<66x16xf32>, vector<66x16xf32>, vector<66x66xf32> -> vector<66x66xf32>
    %39 = arith.addf %38, %18 : vector<66x66xf32>
    %cst_26 = arith.constant dense<0xFF800000> : vector<66xf32>
    %40 = vector.multi_reduction <maximumf>, %39, %cst_26 [1] : vector<66x66xf32> to vector<66xf32>
    %41 = vector.shape_cast %40 : vector<66xf32> to vector<66x1xf32>
    %42 = vector.broadcast %41 : vector<66x1xf32> to vector<66x66xf32>
    %43 = arith.subf %39, %42 : vector<66x66xf32>
    %44 = math.exp %43 : vector<66x66xf32>
    %cst_27 = arith.constant dense<0.000000e+00> : vector<66xf32>
    %45 = vector.multi_reduction <add>, %44, %cst_27 [1] : vector<66x66xf32> to vector<66xf32>
    %46 = vector.shape_cast %45 : vector<66xf32> to vector<66x1xf32>
    %47 = tpu.reciprocal %46 {approx = true} : vector<66x1xf32> -> vector<66x1xf32>
    %48 = vector.broadcast %47 : vector<66x1xf32> to vector<66x66xf32>
    %49 = arith.mulf %44, %48 : vector<66x66xf32>
    %cst_28 = arith.constant dense<0.000000e+00> : vector<66x16xf32>
    %50 = tpu.matmul %49, %37, %cst_28 {dimension_numbers = #tpu.dot_dimension_numbers<[1], [0], [0], [1], [0, 0, 1, 1], [], []>} : vector<66x66xf32>, vector<66x16xf32>, vector<66x16xf32> -> vector<66x16xf32>
    %51 = vector.extract_strided_slice %7 {offsets = [0, 32], sizes = [66, 16], strides = [1, 1]} : vector<66x64xf32> to vector<66x16xf32>
    %52 = vector.extract_strided_slice %12 {offsets = [0, 32], sizes = [66, 16], strides = [1, 1]} : vector<66x64xf32> to vector<66x16xf32>
    %53 = vector.extract_strided_slice %17 {offsets = [0, 32], sizes = [66, 16], strides = [1, 1]} : vector<66x64xf32> to vector<66x16xf32>
    %cst_29 = arith.constant dense<0.000000e+00> : vector<66x66xf32>
    %54 = tpu.matmul %51, %52, %cst_29 {dimension_numbers = #tpu.dot_dimension_numbers<[1], [1], [0], [0], [0, 0, 1, 0], [], []>} : vector<66x16xf32>, vector<66x16xf32>, vector<66x66xf32> -> vector<66x66xf32>
    %55 = arith.addf %54, %18 : vector<66x66xf32>
    %cst_30 = arith.constant dense<0xFF800000> : vector<66xf32>
    %56 = vector.multi_reduction <maximumf>, %55, %cst_30 [1] : vector<66x66xf32> to vector<66xf32>
    %57 = vector.shape_cast %56 : vector<66xf32> to vector<66x1xf32>
    %58 = vector.broadcast %57 : vector<66x1xf32> to vector<66x66xf32>
    %59 = arith.subf %55, %58 : vector<66x66xf32>
    %60 = math.exp %59 : vector<66x66xf32>
    %cst_31 = arith.constant dense<0.000000e+00> : vector<66xf32>
    %61 = vector.multi_reduction <add>, %60, %cst_31 [1] : vector<66x66xf32> to vector<66xf32>
    %62 = vector.shape_cast %61 : vector<66xf32> to vector<66x1xf32>
    %63 = tpu.reciprocal %62 {approx = true} : vector<66x1xf32> -> vector<66x1xf32>
    %64 = vector.broadcast %63 : vector<66x1xf32> to vector<66x66xf32>
    %65 = arith.mulf %60, %64 : vector<66x66xf32>
    %cst_32 = arith.constant dense<0.000000e+00> : vector<66x16xf32>
    %66 = tpu.matmul %65, %53, %cst_32 {dimension_numbers = #tpu.dot_dimension_numbers<[1], [0], [0], [1], [0, 0, 1, 1], [], []>} : vector<66x66xf32>, vector<66x16xf32>, vector<66x16xf32> -> vector<66x16xf32>
    %67 = vector.extract_strided_slice %7 {offsets = [0, 48], sizes = [66, 16], strides = [1, 1]} : vector<66x64xf32> to vector<66x16xf32>
    %68 = vector.extract_strided_slice %12 {offsets = [0, 48], sizes = [66, 16], strides = [1, 1]} : vector<66x64xf32> to vector<66x16xf32>
    %69 = vector.extract_strided_slice %17 {offsets = [0, 48], sizes = [66, 16], strides = [1, 1]} : vector<66x64xf32> to vector<66x16xf32>
    %cst_33 = arith.constant dense<0.000000e+00> : vector<66x66xf32>
    %70 = tpu.matmul %67, %68, %cst_33 {dimension_numbers = #tpu.dot_dimension_numbers<[1], [1], [0], [0], [0, 0, 1, 0], [], []>} : vector<66x16xf32>, vector<66x16xf32>, vector<66x66xf32> -> vector<66x66xf32>
    %71 = arith.addf %70, %18 : vector<66x66xf32>
    %cst_34 = arith.constant dense<0xFF800000> : vector<66xf32>
    %72 = vector.multi_reduction <maximumf>, %71, %cst_34 [1] : vector<66x66xf32> to vector<66xf32>
    %73 = vector.shape_cast %72 : vector<66xf32> to vector<66x1xf32>
    %74 = vector.broadcast %73 : vector<66x1xf32> to vector<66x66xf32>
    %75 = arith.subf %71, %74 : vector<66x66xf32>
    %76 = math.exp %75 : vector<66x66xf32>
    %cst_35 = arith.constant dense<0.000000e+00> : vector<66xf32>
    %77 = vector.multi_reduction <add>, %76, %cst_35 [1] : vector<66x66xf32> to vector<66xf32>
    %78 = vector.shape_cast %77 : vector<66xf32> to vector<66x1xf32>
    %79 = tpu.reciprocal %78 {approx = true} : vector<66x1xf32> -> vector<66x1xf32>
    %80 = vector.broadcast %79 : vector<66x1xf32> to vector<66x66xf32>
    %81 = arith.mulf %76, %80 : vector<66x66xf32>
    %cst_36 = arith.constant dense<0.000000e+00> : vector<66x16xf32>
    %82 = tpu.matmul %81, %69, %cst_36 {dimension_numbers = #tpu.dot_dimension_numbers<[1], [0], [0], [1], [0, 0, 1, 1], [], []>} : vector<66x66xf32>, vector<66x16xf32>, vector<66x16xf32> -> vector<66x16xf32>
    %83 = tpu.concatenate %34, %50, %66, %82 in 1 : vector<66x16xf32>, vector<66x16xf32>, vector<66x16xf32>, vector<66x16xf32> -> vector<66x64xf32>
    %c0_37 = arith.constant 0 : index
    %c0_38 = arith.constant 0 : index
    %84 = vector.load %arg9[%c0_37, %c0_38] : memref<64x64xf32, #tpu.memory_space<vmem>>, vector<64x64xf32>
    %cst_39 = arith.constant dense<0.000000e+00> : vector<66x64xf32>
    %85 = tpu.matmul %83, %84, %cst_39 {dimension_numbers = #tpu.dot_dimension_numbers<[1], [0], [0], [1], [0, 0, 1, 1], [], []>} : vector<66x64xf32>, vector<64x64xf32>, vector<66x64xf32> -> vector<66x64xf32>
    %c0_40 = arith.constant 0 : index
    %c0_41 = arith.constant 0 : index
    %86 = vector.load %arg10[%c0_40, %c0_41] : memref<1x64xf32, #tpu.memory_space<vmem>>, vector<1x64xf32>
    %87 = vector.broadcast %86 : vector<1x64xf32> to vector<66x64xf32>
    %88 = arith.addf %85, %87 : vector<66x64xf32>
    %c0_42 = arith.constant 0 : index
    %c0_43 = arith.constant 0 : index
    %89 = vector.load %arg12[%c0_42, %c0_43] : memref<66x64xf32, #tpu.memory_space<vmem>>, vector<66x64xf32>
    tpu.vector_store %arg12[%c0_42, %c0_43], %88 {strides = array<i32>} : memref<66x64xf32, #tpu.memory_space<vmem>>, vector<66x64xf32>,
    return
  }
}

</mosaic_0001>

<bundles_post_ra>
// kernel: mha_forward.1
= control target key start
LH: loop header
LB: loop body
LE: loop exit
PB: predicated region body
PF: predicated region fallthrough
CT: control target
= control target key end

     0   :  { %v5465_v0 = vmov 0.0|0.0   ;;  %vm3920_vm0 = vmmov 0   ;;  %v5463_v4 = vmov 0.0   ;;  %vm83_vm1 = vcmask 523264   ;;  %s3924_s24 = smov 80   ;;  %s5450_s5 = inlined_call_operand.vmem [shape: f32[64,64], index: 5, kind: input, shape index: {}]   ;;  %s5451_s3 = inlined_call_operand.vmem [shape: f32[64,64], index: 3, kind: input, shape index: {}]   ;;  %s5452_s1 = inlined_call_operand.vmem [shape: f32[66,64], index: 1, kind: input, shape index: {}]   ;;  %s5453_s7 = inlined_call_operand.vmem [shape: f32[64,64], index: 7, kind: input, shape index: {}]   ;;  %s5454_s0 = inlined_call_operand.vmem [shape: f32[66,64], index: 0, kind: input, shape index: {}]   ;;  %s5455_s2 = inlined_call_operand.vmem [shape: f32[66,64], index: 2, kind: input, shape index: {}]   ;;  %s5456_s6 = inlined_call_operand.vmem [shape: f32[1,64], index: 6, kind: input, shape index: {}]   ;;  %s5457_s4 = inlined_call_operand.vmem [shape: f32[1,64], index: 4, kind: input, shape index: {}]   ;;  %s5458_s8 = inlined_call_operand.vmem [shape: f32[1,64], index: 8, kind: input, shape index: {}]   ;;  %s5459_s11 = inlined_call_operand.vmem [shape: f32[66,66], index: 11, kind: input, shape index: {}]   ;;  %s5460_s9 = inlined_call_operand.vmem [shape: f32[64,64], index: 9, kind: input, shape index: {}]   ;;  %s5461_s10 = inlined_call_operand.vmem [shape: f32[1,64], index: 10, kind: input, shape index: {}]   ;;  %s5462_s12 = inlined_call_operand.vmem [shape: f32[66,64], index: 12, kind: output, shape index: {}]  }
   0x1   :  { %3498 = vmatprep.subr.bf16.mxu1 %v5465_v0  ;;  %v221_v1 = vld [vmem:[%s5450_s5] sm:$0xff]  ;;  %v222_v2 = vld [vmem:[%s5450_s5 + $0x8] sm:$0xff]  ;;  %v223_v3 = vld [vmem:[%s5450_s5 + $0x10] sm:$0xff]  ;;  %3013 = vmatprep.mubr.msk.f32.mxu1 %vm3920_vm0, %v5463_v4  ;;  %vm534_vm2 = vcmask 130048   ;;  %vm827_vm4 = vcmask 1041408   ;;  %vm699_vm5 = vcmask 539648  }
   0x2   :  { %v3499_v5 = vpack.c.bf16 %v222_v2, %v221_v1  ;;  %v224_v6 = vld [vmem:[%s5450_s5 + $0x18] sm:$0xff]  ;;  %3486 = vmatprep.subr.bf16.mxu0 %v5465_v0  ;;  %2970 = vmatprep.mubr.msk.f32.mxu0 %vm3920_vm0, %v5463_v4  ;;  %v225_v8 = vld [vmem:[%s5450_s5 + $0x20] sm:$0xff]  ;;  %v226_v10 = vld [vmem:[%s5450_s5 + $0x28] sm:$0xff]  ;;  %vm724_vm6 = vcmask 533504   ;;  %vm2404_vm7 = vcmask 261120   ;;  %vm2414_vm8 = vcmask 392192  }
   0x3   :  { %v3502_v7 = vpack.c.bf16 %v224_v6, %v223_v3  ;;  %v68_v9 = vld [vmem:[%s5451_s3] sm:$0xff]  ;;  %v69_v11 = vld [vmem:[%s5451_s3 + $0x8] sm:$0xff]  ;;  %v70_v12 = vld [vmem:[%s5451_s3 + $0x10] sm:$0xff]  ;;  %v3505_v15 = vpack.c.bf16 %v226_v10, %v225_v8  ;;  %vm2584_vm9 = vcmask 517120  }
   0x4   :  { %3500 = vmatpush3.bf16.msra.mxu1 %v3499_v5  ;;  %v3487_v13 = vpack.c.bf16 %v69_v11, %v68_v9  ;;  %v71_v14 = vld [vmem:[%s5451_s3 + $0x18] sm:$0xff]  ;;  %v227_v16 = vld [vmem:[%s5450_s5 + $0x30] sm:$0xff]  ;;  %v72_v19 = vld [vmem:[%s5451_s3 + $0x20] sm:$0xff] }
   0x5   :  { %3501 = vmatprep.subr.bf16.mxu1 %v5465_v0  ;;  %v3490_v17 = vpack.c.bf16 %v71_v14, %v70_v12  ;;  %v228_v18 = vld [vmem:[%s5450_s5 + $0x38] sm:$0xff]  ;;  %v73_v20 = vld [vmem:[%s5451_s3 + $0x28] sm:$0xff]  ;;  %v74_v23 = vld [vmem:[%s5451_s3 + $0x30] sm:$0xff] }
   0x6   :  { %3488 = vmatpush3.bf16.msra.mxu0 %v3487_v13  ;;  %v3508_v21 = vpack.c.bf16 %v228_v18, %v227_v16  ;;  %v3493_v22 = vpack.c.bf16 %v73_v20, %v72_v19  ;;  %v75_v24 = vld [vmem:[%s5451_s3 + $0x38] sm:$0xff]  ;;  %v50_v25 = vld [vmem:[%s5452_s1] sm:$0xff]  ;;  %v374_v28 = vld [vmem:[%s5453_s7 + $0x8] sm:$0xff]  ;;  %s3926_s3 = smov 32  }
   0x7   :  { %3489 = vmatprep.subr.bf16.mxu0 %v5465_v0  ;;  %v3496_v26 = vpack.c.bf16 %v75_v24, %v74_v23  ;;  %v373_v27 = vld [vmem:[%s5453_s7] sm:$0xff]  ;;  %v51_v29 = vld [vmem:[%s5452_s1 + $0x8] sm:$0xff]  ;;  %v375_v32 = vld [vmem:[%s5453_s7 + $0x10] sm:$0xff] }
   0x8   :  { %3503 = vmatpush3.bf16.msra.mxu1 %v3502_v7  ;;  %v41_v30 = vld [vmem:[%s5454_s0] sm:$0xff]  ;;  %v3511_v31 = vpack.c.bf16 %v374_v28, %v373_v27  ;;  %v376_v33 = vld [vmem:[%s5453_s7 + $0x18] sm:$0xff]  ;;  %v52_v34 = vld [vmem:[%s5452_s1 + $0x10] sm:$0xff] }
   0x9   :  { %3504 = vmatprep.subr.bf16.mxu1 %v5465_v0  ;;  %v42_v35 = vld [vmem:[%s5454_s0 + $0x8] sm:$0xff]  ;;  %v3514_v36 = vpack.c.bf16 %v376_v33, %v375_v32  ;;  %v377_v37 = vld [vmem:[%s5453_s7 + $0x20] sm:$0xff]  ;;  %v53_v39 = vld [vmem:[%s5452_s1 + $0x18] sm:$0xff] }
   0xa   :  { %3491 = vmatpush3.bf16.msra.mxu0 %v3490_v17  ;;  %v378_v38 = vld [vmem:[%s5453_s7 + $0x28] sm:$0xff]  ;;  %v43_v40 = vld [vmem:[%s5454_s0 + $0x10] sm:$0xff]  ;;  %v380_v43 = vld [vmem:[%s5453_s7 + $0x38] sm:$0xff] }
   0xb   :  { %3492 = vmatprep.subr.bf16.mxu0 %v5465_v0  ;;  %v3517_v41 = vpack.c.bf16 %v378_v38, %v377_v37  ;;  %v379_v42 = vld [vmem:[%s5453_s7 + $0x30] sm:$0xff]  ;;  %v54_v44 = vld [vmem:[%s5452_s1 + $0x20] sm:$0xff]  ;;  %v44_v45 = vld [vmem:[%s5454_s0 + $0x18] sm:$0xff] }
   0xc   :  { %3506 = vmatpush3.bf16.msra.mxu1 %v3505_v15  ;;  %v3520_v46 = vpack.c.bf16 %v380_v43, %v379_v42  ;;  %v55_v47 = vld [vmem:[%s5452_s1 + $0x28] sm:$0xff]  ;;  %v45_v48 = vld [vmem:[%s5454_s0 + $0x20] sm:$0xff]  ;;  %v56_v49 = vld [vmem:[%s5452_s1 + $0x30] sm:$0xff] }
   0xd   :  { %3507 = vmatprep.subr.bf16.mxu1 %v5465_v0  ;;  %v46_v50 = vld [vmem:[%s5454_s0 + $0x28] sm:$0xff]  ;;  %v57_v51 = vld [vmem:[%s5452_s1 + $0x38] sm:$0xff]  ;;  %v47_v52 = vld [vmem:[%s5454_s0 + $0x30] sm:$0xff] }
   0xe   :  { %3494 = vmatpush3.bf16.msra.mxu0 %v3493_v22  ;;  %v58_v53 = vld [vmem:[%s5452_s1 + $0x40] sm:$0x3]  ;;  %v48_v54 = vld [vmem:[%s5454_s0 + $0x38] sm:$0xff]  ;;  %v60_v57 = vld [vmem:[%s5455_s2 + $0x8] sm:$0xff] }
   0xf   :  { %3495 = vmatprep.subr.bf16.mxu0 %v5465_v0  ;;  %v49_v55 = vld [vmem:[%s5454_s0 + $0x40] sm:$0x3]  ;;  %v61_v58 = vld [vmem:[%s5455_s2 + $0x10] sm:$0xff]  ;;  %v62_v59 = vld [vmem:[%s5455_s2 + $0x18] sm:$0xff] }
  0x10   :  { %3509 = vmatpush3.bf16.msra.mxu1 %v3508_v21  ;;  %v59_v56 = vld [vmem:[%s5455_s2] sm:$0xff]  ;;  %v64_v61 = vld [vmem:[%s5455_s2 + $0x28] sm:$0xff]  ;;  %v65_v62 = vld [vmem:[%s5455_s2 + $0x30] sm:$0xff] }
  0x11   :  { %3522 = vmatprep.subr.bf16.mxu1 %v5465_v0  ;;  %v63_v60 = vld [vmem:[%s5455_s2 + $0x20] sm:$0xff]  ;;  %v66_v63 = vld [vmem:[%s5455_s2 + $0x38] sm:$0xff]  ;;  %vm4252_vm3 = vmpackc.low %vm534_vm2, %vm534_vm2 }
  0x12   :  { %3497 = vmatpush3.bf16.msra.mxu0 %v3496_v26  ;;  %v67_v1 = vld [vmem:[%s5455_s2 + $0x40] sm:$0x3]  ;;  %s3922_s2 = smov 112  }
  0x13   :  { %3014 = vmatmul.mubr.msk.f32.vlgmr.msra.gmra.mrb[0].mxu1 %vm83_vm1, %v50_v25  ;;  %3510 = vmatprep.subr.bf16.mxu0 %v5465_v0  ;;  %v2600_v5 = vld [vmem:[%s5456_s6] ss:$0 sm:$0xff] }
  0x14   :  { %3016 = vmatprep.mubr.msk.f32.mxu1 %vm3920_vm0, %v5463_v4 }
  0x15   :  { %2971 = vmatmul.mubr.msk.f32.vlgmr.msra.gmra.mrb[0].mxu0 %vm83_vm1, %v41_v30 }
  0x16   :  { %2973 = vmatprep.mubr.msk.f32.mxu0 %vm3920_vm0, %v5463_v4  ;;  %3512 = vmatpush3.bf16.msra.mxu0 %v3511_v31 }
  0x17   :  { %3017 = vmatmul.mubr.msk.f32.gmra.mrb[2].mxu1 %vm83_vm1, %v51_v29  ;;  %3513 = vmatprep.subr.bf16.mxu0 %v5465_v0 }
  0x18   :  { %3019 = vmatprep.mubr.msk.f32.mxu1 %vm3920_vm0, %v5463_v4 }
  0x19   :  { %2974 = vmatmul.mubr.msk.f32.gmra.mrb[2].mxu0 %vm83_vm1, %v42_v35 }
  0x1a   :  { %2976 = vmatprep.mubr.msk.f32.mxu0 %vm3920_vm0, %v5463_v4  ;;  %3515 = vmatpush3.bf16.msra.mxu0 %v3514_v36 }
  0x1b   :  { %3020 = vmatmul.mubr.msk.f32.gmra.mrb[4].mxu1 %vm83_vm1, %v52_v34  ;;  %3516 = vmatprep.subr.bf16.mxu0 %v5465_v0 }
  0x1c   :  { %3022 = vmatprep.mubr.msk.f32.mxu1 %vm3920_vm0, %v5463_v4 }
  0x1d   :  { %2977 = vmatmul.mubr.msk.f32.gmra.mrb[4].mxu0 %vm83_vm1, %v43_v40 }
  0x1e   :  { %2979 = vmatprep.mubr.msk.f32.mxu0 %vm3920_vm0, %v5463_v4  ;;  %3518 = vmatpush3.bf16.msra.mxu0 %v3517_v41 }
  0x1f   :  { %3023 = vmatmul.mubr.msk.f32.gmra.mrb[6].mxu1 %vm83_vm1, %v53_v39  ;;  %3519 = vmatprep.subr.bf16.mxu0 %v5465_v0 }
  0x20   :  { %3025 = vmatprep.mubr.msk.f32.mxu1 %vm3920_vm0, %v5463_v4 }
  0x21   :  { %2980 = vmatmul.mubr.msk.f32.gmra.mrb[6].mxu0 %vm83_vm1, %v44_v45 }
  0x22   :  { %2982 = vmatprep.mubr.msk.f32.mxu0 %vm3920_vm0, %v5463_v4  ;;  %3521 = vmatpush3.bf16.msra.mxu0 %v3520_v46 }
  0x23   :  { %3026 = vmatmul.mubr.msk.f32.gmra.mrb[8].mxu1 %vm83_vm1, %v54_v44  ;;  %3538 = vmatprep.subr.bf16.mxu0 %v5465_v0 }
  0x24   :  { %3028 = vmatprep.mubr.msk.f32.mxu1 %vm3920_vm0, %v5463_v4 }
  0x25   :  { %2983 = vmatmul.mubr.msk.f32.gmra.mrb[8].mxu0 %vm83_vm1, %v45_v48 }
  0x26   :  { %2985 = vmatprep.mubr.msk.f32.mxu0 %vm3920_vm0, %v5463_v4 }
  0x27   :  { %3029 = vmatmul.mubr.msk.f32.gmra.mrb[10].mxu1 %vm83_vm1, %v55_v47 }
  0x28   :  { %3031 = vmatprep.mubr.msk.f32.mxu1 %vm3920_vm0, %v5463_v4 }
  0x29   :  { %2986 = vmatmul.mubr.msk.f32.gmra.mrb[10].mxu0 %vm83_vm1, %v46_v50 }
  0x2a   :  { %2988 = vmatprep.mubr.msk.f32.mxu0 %vm3920_vm0, %v5463_v4 }
  0x2b   :  { %3032 = vmatmul.mubr.msk.f32.gmra.mrb[12].mxu1 %vm83_vm1, %v56_v49 }
  0x2c   :  { %3034 = vmatprep.mubr.msk.f32.mxu1 %vm3920_vm0, %v5463_v4 }
  0x2d   :  { %2989 = vmatmul.mubr.msk.f32.gmra.mrb[12].mxu0 %vm83_vm1, %v47_v52  ;;  %v2590_v52 = vld [vmem:[%s5457_s4] ss:$0 sm:$0xff]  ;;  %s3923_s4 = smov 96  }
  0x2e   :  { %2991 = vmatprep.mubr.msk.f32.mxu0 %vm3920_vm0, %v5463_v4 }
  0x2f   :  { %3035 = vmatmul.mubr.msk.f32.gmra.mrb[14].mxu1 %vm83_vm1, %v57_v51 }
  0x30   :  { %3037 = vmatprep.mubr.msk.f32.mxu1 %vm3920_vm0, %v5463_v4 }
  0x31   :  { %2992 = vmatmul.mubr.msk.f32.gmra.mrb[14].mxu0 %vm83_vm1, %v48_v54 }
  0x32   :  { %2994 = vmatprep.mubr.msk.f32.mxu0 %vm3920_vm0, %v5463_v4 }
  0x33   :  { %3038 = vmatmul.mubr.msk.f32.gmra.mrb[16].mxu1 %vm83_vm1, %v58_v53 }
  0x34   :  { %3101 = vmatprep.mubr.msk.f32.mxu1 %vm3920_vm0, %v5463_v4 }
  0x35   :  { %2995 = vmatmul.mubr.msk.f32.gmra.mrb[16].mxu0 %vm83_vm1, %v49_v55 }
  0x36   :  { %3056 = vmatprep.mubr.msk.f32.mxu0 %vm3920_vm0, %v5463_v4 }
  0x39   :  { %3057 = vmatmul.mubr.msk.f32.vlgmr.msra.gmra.mrb[18].mxu0 %vm83_vm1, %v59_v56 }
  0x3a   :  { %3059 = vmatprep.mubr.msk.f32.mxu0 %vm3920_vm0, %v5463_v4 }
  0x3d   :  { %3060 = vmatmul.mubr.msk.f32.gmra.mrb[20].mxu0 %vm83_vm1, %v60_v57 }
  0x3e   :  { %3062 = vmatprep.mubr.msk.f32.mxu0 %vm3920_vm0, %v5463_v4 }
  0x41   :  { %3063 = vmatmul.mubr.msk.f32.gmra.mrb[22].mxu0 %vm83_vm1, %v61_v58 }
  0x42   :  { %3065 = vmatprep.mubr.msk.f32.mxu0 %vm3920_vm0, %v5463_v4 }
  0x45   :  { %3066 = vmatmul.mubr.msk.f32.gmra.mrb[24].mxu0 %vm83_vm1, %v62_v59 }
  0x46   :  { %3068 = vmatprep.mubr.msk.f32.mxu0 %vm3920_vm0, %v5463_v4 }
  0x49   :  { %3069 = vmatmul.mubr.msk.f32.gmra.mrb[26].mxu0 %vm83_vm1, %v63_v60 }
  0x4a   :  { %3071 = vmatprep.mubr.msk.f32.mxu0 %vm3920_vm0, %v5463_v4 }
  0x4d   :  { %3072 = vmatmul.mubr.msk.f32.gmra.mrb[28].mxu0 %vm83_vm1, %v64_v61 }
  0x4e   :  { %3074 = vmatprep.mubr.msk.f32.mxu0 %vm3920_vm0, %v5463_v4 }
  0x51   :  { %3075 = vmatmul.mubr.msk.f32.gmra.mrb[30].mxu0 %vm83_vm1, %v65_v62 }
  0x52   :  { %3077 = vmatprep.mubr.msk.f32.mxu0 %vm3920_vm0, %v5463_v4 }
  0x55   :  { %3078 = vmatmul.mubr.msk.f32.gmra.mrb[32].mxu0 %vm83_vm1, %v66_v63 }
  0x56   :  { %3080 = vmatprep.mubr.msk.f32.mxu0 %vm3920_vm0, %v5463_v4 }
  0x59   :  { %3081 = vmatmul.mubr.msk.f32.gmra.mrb[34].mxu0 %vm83_vm1, %v67_v1 }
  0x5a   :  { %3146 = vmatprep.mubr.msk.f32.mxu0 %vm3920_vm0, %v5463_v4 }
  0xe6   :  { %v329_v2 = vpop.f32.mrb[0].mxu1 }
  0xe7   :  { %v3015_v3 = vpop.f32.mrb[1].mxu1  ;;  %v330_v8 = vadd.f32 %v2600_v5, %v329_v2 }
  0xe8   :  { %v4248_v7 = vpop.f32.mrb[0].mxu0 }
  0xe9   :  { %v2972_v11 = vpop.f32.mrb[1].mxu0  ;;  %v4292_v57 = vadd.f32 %v2590_v52, %v4248_v7 }
  0xea   :  { %v334_v6 = vpop.f32.mrb[2].mxu1 }
  0xeb   :  { %v335_v9 = vadd.f32 %v2600_v5, %v334_v6  ;;  %v3018_v10 = vpop.f32.mrb[3].mxu1 }
  0xec   :  { %v182_v16 = vpop.f32.mrb[2].mxu0 }
  0xed   :  { %v3523_v13 = vpack.c.bf16 %v335_v9, %v330_v8  ;;  %v4256_v14 = vpack.i.bf16 %v335_v9, %v330_v8  ;;  %v2975_v18 = vpop.f32.mrb[3].mxu0  ;;  %v4296_v59 = vadd.f32 %v2590_v52, %v182_v16  ;;  %v4378_v8 = vld [vmem:[%s5458_s8] ss:$0 sm:$0xff] }
  0xee   :  { %v339_v15 = vpop.f32.mrb[4].mxu1 }
  0xef   :  { %3656 = vrot.lane.b32.xlu0 %v4256_v14, %s3922_s2  ;;  %v3021_v17 = vpop.f32.mrb[5].mxu1  ;;  %3525 = vmatpush3.bf16.xpose.msk.msra.mxu1 %vm4252_vm3, %v3523_v13  ;;  %v340_v21 = vadd.f32 %v2600_v5, %v339_v15 }
  0xf0   :  { %3526 = vmatprep.subr.bf16.mxu1 %v5465_v0  ;;  %v187_v20 = vpop.f32.mrb[4].mxu0 }
  0xf1   :  { %v2978_v24 = vpop.f32.mrb[5].mxu0  ;;  %v4304_v61 = vadd.f32 %v2590_v52, %v187_v20 }
  0xf2   :  { %v344_v19 = vpop.f32.mrb[6].mxu1 }
  0xf3   :  { %v345_v22 = vadd.f32 %v2600_v5, %v344_v19  ;;  %v3024_v23 = vpop.f32.mrb[7].mxu1 }
  0xf4   :  { %v192_v28 = vpop.f32.mrb[6].mxu0 }
  0xf5   :  { %v3527_v25 = vpack.c.bf16 %v345_v22, %v340_v21  ;;  %v4263_v26 = vpack.i.bf16 %v345_v22, %v340_v21  ;;  %v2981_v30 = vpop.f32.mrb[7].mxu0  ;;  %v4309_v62 = vadd.f32 %v2590_v52, %v192_v28 }
  0xf6   :  { %v349_v27 = vpop.f32.mrb[8].mxu1 }
  0xf7   :  { %3661 = vrot.lane.b32.xlu0 %v4263_v26, %s3922_s2  ;;  %v3027_v29 = vpop.f32.mrb[9].mxu1  ;;  %3529 = vmatpush3.bf16.xpose.msk.msra.mxu1 %vm4252_vm3, %v3527_v25  ;;  %v350_v33 = vadd.f32 %v2600_v5, %v349_v27 }
  0xf8   :  { %3530 = vmatprep.subr.bf16.mxu1 %v5465_v0  ;;  %v197_v32 = vpop.f32.mrb[8].mxu0 }
  0xf9   :  { %v2984_v36 = vpop.f32.mrb[9].mxu0  ;;  %v4319_v63 = vadd.f32 %v2590_v52, %v197_v32 }
  0xfa   :  { %v354_v31 = vpop.f32.mrb[10].mxu1 }
  0xfb   :  { %v355_v34 = vadd.f32 %v2600_v5, %v354_v31  ;;  %v3030_v35 = vpop.f32.mrb[11].mxu1 }
  0xfc   :  { %v202_v40 = vpop.f32.mrb[10].mxu0 }
  0xfd   :  { %v3531_v37 = vpack.c.bf16 %v355_v34, %v350_v33  ;;  %v4270_v38 = vpack.i.bf16 %v355_v34, %v350_v33  ;;  %v2987_v42 = vpop.f32.mrb[11].mxu0  ;;  %v4325_v1 = vadd.f32 %v2590_v52, %v202_v40 }
  0xfe   :  { %v359_v39 = vpop.f32.mrb[12].mxu1 }
  0xff   :  { %3666 = vrot.lane.b32.xlu1 %v4270_v38, %s3922_s2  ;;  %v3033_v41 = vpop.f32.mrb[13].mxu1  ;;  %3533 = vmatpush3.bf16.xpose.msk.msra.mxu1 %vm4252_vm3, %v3531_v37  ;;  %v360_v45 = vadd.f32 %v2600_v5, %v359_v39 }
 0x100   :  { %3534 = vmatprep.subr.bf16.mxu1 %v5465_v0  ;;  %v207_v44 = vpop.f32.mrb[12].mxu0 }
 0x101   :  { %v2990_v48 = vpop.f32.mrb[13].mxu0  ;;  %v4335_v2 = vadd.f32 %v2590_v52, %v207_v44 }
 0x102   :  { %v364_v43 = vpop.f32.mrb[14].mxu1 }
 0x103   :  { %v365_v46 = vadd.f32 %v2600_v5, %v364_v43  ;;  %v3036_v47 = vpop.f32.mrb[15].mxu1 }
 0x104   :  { %v212_v53 = vpop.f32.mrb[14].mxu0 }
 0x105   :  { %v3535_v49 = vpack.c.bf16 %v365_v46, %v360_v45  ;;  %v4277_v50 = vpack.i.bf16 %v365_v46, %v360_v45  ;;  %v2993_v56 = vpop.f32.mrb[15].mxu0  ;;  %v4341_v3 = vadd.f32 %v2590_v52, %v212_v53 }
 0x106   :  { %v369_v51 = vpop.f32.mrb[16].mxu1 }
 0x107   :  { %v4282_v54 = vadd.f32 %v2600_v5, %v369_v51  ;;  %3671 = vrot.lane.b32.xlu1 %v4277_v50, %s3922_s2  ;;  %3537 = vmatpush3.bf16.xpose.msk.msra.mxu1 %vm4252_vm3, %v3535_v49  ;;  %v3039_v55 = vpop.f32.mrb[17].mxu1 }
 0x108   :  { %3099 = vmatprep.subr.mxu1 %v5463_v4  ;;  %v217_v58 = vpop.f32.mrb[16].mxu0 }
 0x109   :  { %975 = vrot.lane.b32.xlu0 %v4282_v54, %s3922_s2  ;;  %v2996_v60 = vpop.f32.mrb[17].mxu0  ;;  %v4347_v5 = vadd.f32 %v2590_v52, %v217_v58 }
 0x10b   :  { %3676 = vrot.lane.b32.xlu1 %v4256_v14, %s3923_s4 }
 0x10c   :  { %v481_v6 = vpop.f32.mrb[18].mxu0 }
 0x10d   :  { %941 = vrot.lane.b32.xlu0 %v4292_v57, %s3922_s2  ;;  %v3058_v7 = vpop.f32.mrb[19].mxu0  ;;  %v482_v23 = vadd.f32 %v4378_v8, %v481_v6 }
 0x10f   :  { %3100 = vmatpush3.xpose.msk.msra.mxu1 %vm534_vm2, %v4282_v54  ;;  %943 = vrot.lane.b32.xlu1 %v4296_v59, %s3922_s2 }
 0x110   :  { %3550 = vmatprep.subr.bf16.mxu1 %v5465_v0  ;;  %v486_v9 = vpop.f32.mrb[20].mxu0 }
 0x111   :  { %3681 = vrot.lane.b32.xlu0 %v4263_v26, %s3923_s4  ;;  %v3061_v10 = vpop.f32.mrb[21].mxu0  ;;  %v487_v24 = vadd.f32 %v4378_v8, %v486_v9 }
 0x112   :  { %3102 = vmatmul.mubr.msk.f32.vlgmr.msra.gmra.mrb[18].mxu1 %vm534_vm2, %v4292_v57 }
 0x113   :  { %945 = vrot.lane.b32.xlu1 %v4304_v61, %s3922_s2  ;;  %3104 = vmatprep.mubr.msk.f32.mxu1 %vm3920_vm0, %v5463_v4  ;;  %v4427_v33 = vpack.i.bf16 %v487_v24, %v482_v23  ;;  %v3539_v39 = vpack.c.bf16 %v487_v24, %v482_v23 }
 0x114   :  { %v491_v11 = vpop.f32.mrb[22].mxu0 }
 0x115   :  { %947 = vrot.lane.b32.xlu0 %v4309_v62, %s3922_s2  ;;  %v4389_v13 = vadd.f32 %v4378_v8, %v491_v11  ;;  %3540 = vmatpush3.bf16.msra.mxu0 %v3539_v39 }
 0x116   :  { %3105 = vmatmul.mubr.msk.f32.gmra.mrb[20].mxu1 %vm534_vm2, %v4296_v59  ;;  %3541 = vmatprep.subr.bf16.mxu0 %v5465_v0 }
 0x117   :  { %3686 = vrot.lane.b32.xlu1 %v4270_v38, %s3923_s4  ;;  %3107 = vmatprep.mubr.msk.f32.mxu1 %vm3920_vm0, %v5463_v4 }
 0x119   :  { %949 = vrot.lane.b32.xlu0 %v4319_v63, %s3922_s2 }
 0x11a   :  { %3108 = vmatmul.mubr.msk.f32.gmra.mrb[22].mxu1 %vm534_vm2, %v4304_v61 }
 0x11b   :  { %951 = vrot.lane.b32.xlu1 %v4325_v1, %s3922_s2  ;;  %3110 = vmatprep.mubr.msk.f32.mxu1 %vm3920_vm0, %v5463_v4 }
 0x11d   :  { %3691 = vrot.lane.b32.xlu0 %v4277_v50, %s3923_s4 }
 0x11e   :  { %3111 = vmatmul.mubr.msk.f32.gmra.mrb[24].mxu1 %vm534_vm2, %v4309_v62 }
 0x11f   :  { %953 = vrot.lane.b32.xlu1 %v4335_v2, %s3922_s2  ;;  %3113 = vmatprep.mubr.msk.f32.mxu1 %vm3920_vm0, %v5463_v4 }
 0x121   :  { %955 = vrot.lane.b32.xlu0 %v4341_v3, %s3922_s2 }
 0x122   :  { %3114 = vmatmul.mubr.msk.f32.gmra.mrb[26].mxu1 %vm534_vm2, %v4319_v63 }
 0x123   :  { %957 = vrot.lane.b32.xlu1 %v4347_v5, %s3922_s2  ;;  %3116 = vmatprep.mubr.msk.f32.mxu1 %vm3920_vm0, %v5463_v4 }
 0x125   :  { %1429 = vrot.lane.b32.xlu0 %v4282_v54, %s3923_s4 }
 0x126   :  { %3117 = vmatmul.mubr.msk.f32.gmra.mrb[28].mxu1 %vm534_vm2, %v4325_v1 }
 0x127   :  { %3696 = vrot.lane.b32.xlu1 %v4256_v14, %s3924_s24  ;;  %3119 = vmatprep.mubr.msk.f32.mxu1 %vm3920_vm0, %v5463_v4  ;;  %v3064_v14 = vpop.f32.mrb[23].mxu0 }
 0x128   :  { %v496_v15 = vpop.f32.mrb[24].mxu0 }
 0x129   :  { %1395 = vrot.lane.b32.xlu0 %v4292_v57, %s3923_s4  ;;  %v4394_v16 = vadd.f32 %v4378_v8, %v496_v15  ;;  %v3067_v17 = vpop.f32.mrb[25].mxu0 }
 0x12a   :  { %3120 = vmatmul.mubr.msk.f32.gmra.mrb[30].mxu1 %vm534_vm2, %v4335_v2  ;;  %v501_v19 = vpop.f32.mrb[26].mxu0 }
 0x12b   :  { %1397 = vrot.lane.b32.xlu1 %v4296_v59, %s3923_s4  ;;  %3122 = vmatprep.mubr.msk.f32.mxu1 %vm3920_vm0, %v5463_v4  ;;  %v4404_v18 = vpack.i.bf16 %v4394_v16, %v4389_v13  ;;  %v3070_v20 = vpop.f32.mrb[27].mxu0  ;;  %v4411_v21 = vadd.f32 %v4378_v8, %v501_v19  ;;  %v3542_v45 = vpack.c.bf16 %v4394_v16, %v4389_v13 }
 0x12c   :  { %v506_v22 = vpop.f32.mrb[28].mxu0 }
 0x12d   :  { %3701 = vrot.lane.b32.xlu0 %v4263_v26, %s3924_s24  ;;  %v507_v25 = vadd.f32 %v4378_v8, %v506_v22  ;;  %v3073_v26 = vpop.f32.mrb[29].mxu0  ;;  %3543 = vmatpush3.bf16.msra.mxu0 %v3542_v45 }
 0x12e   :  { %3123 = vmatmul.mubr.msk.f32.gmra.mrb[32].mxu1 %vm534_vm2, %v4341_v3  ;;  %v511_v27 = vpop.f32.mrb[30].mxu0  ;;  %3544 = vmatprep.subr.bf16.mxu0 %v5465_v0 }
 0x12f   :  { %1399 = vrot.lane.b32.xlu1 %v4304_v61, %s3923_s4  ;;  %3125 = vmatprep.mubr.msk.f32.mxu1 %vm3920_vm0, %v5463_v4  ;;  %v3076_v28 = vpop.f32.mrb[31].mxu0  ;;  %v4421_v29 = vadd.f32 %v4378_v8, %v511_v27  ;;  %v4424_v31 = vpack.i.bf16 %v507_v25, %v4411_v21 }
 0x130   :  { %v516_v30 = vpop.f32.mrb[32].mxu0 }
 0x131   :  { %1401 = vrot.lane.b32.xlu0 %v4309_v62, %s3923_s4  ;;  %v517_v32 = vadd.f32 %v4378_v8, %v516_v30  ;;  %v3079_v34 = vpop.f32.mrb[33].mxu0 }
 0x132   :  { %3126 = vmatmul.mubr.msk.f32.gmra.mrb[34].mxu1 %vm534_vm2, %v4347_v5  ;;  %v521_v36 = vpop.f32.mrb[34].mxu0 }
 0x133   :  { %3706 = vrot.lane.b32.xlu1 %v4270_v38, %s3924_s24  ;;  %3191 = vmatprep.mubr.msk.f32.mxu1 %vm3920_vm0, %v5463_v4  ;;  %v4434_v35 = vpack.i.bf16 %v517_v32, %v4421_v29  ;;  %v3082_v37 = vpop.f32.mrb[35].mxu0  ;;  %v4473_v42 = vadd.f32 %v4378_v8, %v521_v36  ;;  %v3548_v55 = vpack.c.bf16 %v517_v32, %v4421_v29 }
 0x135   :  { %1403 = vrot.lane.b32.xlu0 %v4319_v63, %s3923_s4 }
 0x137   :  { %1405 = vrot.lane.b32.xlu1 %v4325_v1, %s3923_s4 }
 0x139   :  { %3711 = vrot.lane.b32.xlu0 %v4277_v50, %s3924_s24  ;;  %v3545_v50 = vpack.c.bf16 %v507_v25, %v4411_v21 }
 0x13b   :  { %1407 = vrot.lane.b32.xlu1 %v4335_v2, %s3923_s4  ;;  %3546 = vmatpush3.bf16.msra.mxu0 %v3545_v50 }
 0x13c   :  { %3547 = vmatprep.subr.bf16.mxu0 %v5465_v0 }
 0x13d   :  { %1409 = vrot.lane.b32.xlu0 %v4341_v3, %s3923_s4 }
 0x13f   :  { %1411 = vrot.lane.b32.xlu1 %v4347_v5, %s3923_s4  ;;  %3549 = vmatpush3.bf16.msra.mxu0 %v3548_v55 }
 0x140   :  { %3144 = vmatprep.subr.mxu0 %v5463_v4 }
 0x141   :  { %1875 = vrot.lane.b32.xlu0 %v4282_v54, %s3924_s24 }
 0x143   :  { %1841 = vrot.lane.b32.xlu1 %v4292_v57, %s3924_s24  ;;  %3145 = vmatpush3.msk.msra.mxu0 %vm827_vm4, %v4473_v42 }
 0x144   :  { %3566 = vmatprep.subr.bf16.mxu0 %v5465_v0 }
 0x145   :  { %1843 = vrot.lane.b32.xlu0 %v4296_v59, %s3924_s24 }
 0x147   :  { %1845 = vrot.lane.b32.xlu1 %v4304_v61, %s3924_s24 }
 0x149   :  { %1847 = vrot.lane.b32.xlu0 %v4309_v62, %s3924_s24 }
 0x14b   :  { %1849 = vrot.lane.b32.xlu1 %v4319_v63, %s3924_s24 }
 0x14d   :  { %1851 = vrot.lane.b32.xlu0 %v4325_v1, %s3924_s24 }
 0x14f   :  { %1853 = vrot.lane.b32.xlu1 %v4335_v2, %s3924_s24 }
 0x151   :  { %1855 = vrot.lane.b32.xlu0 %v4341_v3, %s3924_s24 }
 0x153   :  { %1857 = vrot.lane.b32.xlu1 %v4347_v5, %s3924_s24 }
 0x155   :  { %3716 = vrot.lane.b32.xlu0 %v4427_v33, %s3922_s2 }
 0x157   :  { %3726 = vrot.lane.b32.xlu1 %v4404_v18, %s3922_s2 }
 0x159   :  { %3721 = vrot.lane.b32.xlu0 %v4427_v33, %s3923_s4 }
 0x15b   :  { %3731 = vrot.lane.b32.xlu1 %v4404_v18, %s3923_s4 }
 0x15d   :  { %3736 = vrot.lane.b32.xlu0 %v4424_v31, %s3922_s2 }
 0x15f   :  { %3741 = vrot.lane.b32.xlu1 %v4424_v31, %s3923_s4 }
 0x161   :  { %v3657_v38 = vpop.permute.xlu0 %3656  ;;  %3751 = vrot.lane.b32.xlu0 %v4434_v35, %s3923_s4 }
 0x162   :  { %v3659_v40 = vunpack.i.h.bf16 %v3657_v38  ;;  %v3658_v41 = vunpack.i.l.bf16 %v3657_v38 }
 0x163   :  { %3746 = vrot.lane.b32.xlu1 %v4434_v35, %s3922_s2 }
 0x164   :  { %v3551_v43 = vpack.c.bf16 %v3659_v40, %v3658_v41 }
 0x166   :  { %3553 = vmatpush3.bf16.xpose.msk.msra.mxu1 %vm4252_vm3, %v3551_v43 }
 0x167   :  { %3554 = vmatprep.subr.bf16.mxu1 %v5465_v0  ;;  %1246 = vrot.lane.b32.xlu1 %v4473_v42, %s3922_s2 }
 0x169   :  { %v3662_v44 = vpop.permute.xlu0 %3661 }
 0x16a   :  { %v3664_v46 = vunpack.i.h.bf16 %v3662_v44  ;;  %v3663_v47 = vunpack.i.l.bf16 %v3662_v44 }
 0x16b   :  { %1692 = vrot.lane.b32.xlu1 %v4473_v42, %s3923_s4 }
 0x16c   :  { %v3555_v48 = vpack.c.bf16 %v3664_v46, %v3663_v47 }
 0x16e   :  { %3557 = vmatpush3.bf16.xpose.msk.msra.mxu1 %vm4252_vm3, %v3555_v48 }
 0x16f   :  { %3558 = vmatprep.subr.bf16.mxu1 %v5465_v0 }
 0x171   :  { %v3667_v49 = vpop.permute.xlu1 %3666 }
 0x172   :  { %v3669_v51 = vunpack.i.h.bf16 %v3667_v49  ;;  %v3668_v52 = vunpack.i.l.bf16 %v3667_v49 }
 0x174   :  { %v3559_v53 = vpack.c.bf16 %v3669_v51, %v3668_v52 }
 0x176   :  { %3561 = vmatpush3.bf16.xpose.msk.msra.mxu1 %vm4252_vm3, %v3559_v53 }
 0x177   :  { %3562 = vmatprep.subr.bf16.mxu1 %v5465_v0 }
 0x179   :  { %v3672_v54 = vpop.permute.xlu1 %3671 }
 0x17a   :  { %v3674_v56 = vunpack.i.h.bf16 %v3672_v54  ;;  %v3673_v57 = vunpack.i.l.bf16 %v3672_v54 }
 0x17b   :  { %v976_v58 = vpop.permute.xlu0 %975 }
 0x17c   :  { %v3563_v59 = vpack.c.bf16 %v3674_v56, %v3673_v57 }
 0x17d   :  { %v3677_v60 = vpop.permute.xlu1 %3676 }
 0x17e   :  { %3565 = vmatpush3.bf16.xpose.msk.msra.mxu1 %vm4252_vm3, %v3563_v59  ;;  %v3679_v1 = vunpack.i.h.bf16 %v3677_v60  ;;  %v3678_v2 = vunpack.i.l.bf16 %v3677_v60  ;;  %v4604_v60 = vld [vmem:[%s5459_s11] sm:$0xff] }
 0x17f   :  { %v942_v61 = vpop.permute.xlu0 %941  ;;  %3189 = vmatprep.subr.mxu1 %v5463_v4 }
 0x180   :  { %v3579_v6 = vpack.c.bf16 %v3679_v1, %v3678_v2  ;;  %v4615_v2 = vld [vmem:[%s5459_s11 + $0x8] sm:$0xff] }
 0x181   :  { %v944_v62 = vpop.permute.xlu1 %943 }
 0x183   :  { %v3682_v63 = vpop.permute.xlu0 %3681 }
 0x184   :  { %v3684_v8 = vunpack.i.h.bf16 %v3682_v63  ;;  %v3683_v9 = vunpack.i.l.bf16 %v3682_v63 }
 0x185   :  { %v946_v3 = vpop.permute.xlu1 %945 }
 0x186   :  { %3190 = vmatpush3.xpose.msk.msra.mxu1 %vm534_vm2, %v976_v58  ;;  %v3583_v11 = vpack.c.bf16 %v3684_v8, %v3683_v9  ;;  %v4628_v9 = vld [vmem:[%s5459_s11 + $0x10] sm:$0xff] }
 0x187   :  { %v948_v5 = vpop.permute.xlu0 %947  ;;  %3578 = vmatprep.subr.bf16.mxu1 %v5465_v0 }
 0x189   :  { %3192 = vmatmul.mubr.msk.f32.vlgmr.msra.gmra.mrb[36].mxu1 %vm534_vm2, %v942_v61  ;;  %v3687_v7 = vpop.permute.xlu1 %3686 }
 0x18a   :  { %3581 = vmatpush3.bf16.xpose.msk.msra.mxu1 %vm4252_vm3, %v3579_v6  ;;  %3194 = vmatprep.mubr.msk.f32.mxu1 %vm3920_vm0, %v5463_v4  ;;  %v3689_v15 = vunpack.i.h.bf16 %v3687_v7  ;;  %v3688_v16 = vunpack.i.l.bf16 %v3687_v7 }
 0x18b   :  { %3582 = vmatprep.subr.bf16.mxu1 %v5465_v0  ;;  %v950_v10 = vpop.permute.xlu0 %949 }
 0x18c   :  { %v3587_v19 = vpack.c.bf16 %v3689_v15, %v3688_v16  ;;  %v4641_v16 = vld [vmem:[%s5459_s11 + $0x18] sm:$0xff] }
 0x18d   :  { %3195 = vmatmul.mubr.msk.f32.gmra.mrb[38].mxu1 %vm534_vm2, %v944_v62  ;;  %v952_v13 = vpop.permute.xlu1 %951 }
 0x18e   :  { %3197 = vmatprep.mubr.msk.f32.mxu1 %vm3920_vm0, %v5463_v4 }
 0x18f   :  { %v3692_v14 = vpop.permute.xlu0 %3691 }
 0x190   :  { %v3694_v21 = vunpack.i.h.bf16 %v3692_v14  ;;  %v3693_v22 = vunpack.i.l.bf16 %v3692_v14 }
 0x191   :  { %3198 = vmatmul.mubr.msk.f32.gmra.mrb[40].mxu1 %vm534_vm2, %v946_v3  ;;  %v954_v17 = vpop.permute.xlu1 %953 }
 0x192   :  { %3585 = vmatpush3.bf16.xpose.msk.msra.mxu1 %vm4252_vm3, %v3583_v11  ;;  %3200 = vmatprep.mubr.msk.f32.mxu1 %vm3920_vm0, %v5463_v4  ;;  %v3591_v25 = vpack.c.bf16 %v3694_v21, %v3693_v22 }
 0x193   :  { %3586 = vmatprep.subr.bf16.mxu1 %v5465_v0  ;;  %v956_v20 = vpop.permute.xlu0 %955 }
 0x195   :  { %3201 = vmatmul.mubr.msk.f32.gmra.mrb[42].mxu1 %vm534_vm2, %v948_v5  ;;  %v958_v23 = vpop.permute.xlu1 %957 }
 0x196   :  { %3203 = vmatprep.mubr.msk.f32.mxu1 %vm3920_vm0, %v5463_v4 }
 0x197   :  { %v1430_v24 = vpop.permute.xlu0 %1429 }
 0x199   :  { %3204 = vmatmul.mubr.msk.f32.gmra.mrb[44].mxu1 %vm534_vm2, %v950_v10  ;;  %v3697_v26 = vpop.permute.xlu1 %3696 }
 0x19a   :  { %3589 = vmatpush3.bf16.xpose.msk.msra.mxu1 %vm4252_vm3, %v3587_v19  ;;  %3206 = vmatprep.mubr.msk.f32.mxu1 %vm3920_vm0, %v5463_v4  ;;  %v3699_v28 = vunpack.i.h.bf16 %v3697_v26  ;;  %v3698_v29 = vunpack.i.l.bf16 %v3697_v26 }
 0x19b   :  { %3590 = vmatprep.subr.bf16.mxu1 %v5465_v0  ;;  %v1396_v27 = vpop.permute.xlu0 %1395 }
 0x19c   :  { %v3607_v34 = vpack.c.bf16 %v3699_v28, %v3698_v29  ;;  %v4664_v28 = vld [vmem:[%s5459_s11 + $0x28] sm:$0xff] }
 0x19d   :  { %3207 = vmatmul.mubr.msk.f32.gmra.mrb[46].mxu1 %vm534_vm2, %v952_v13  ;;  %v1398_v30 = vpop.permute.xlu1 %1397 }
 0x19e   :  { %3209 = vmatprep.mubr.msk.f32.mxu1 %vm3920_vm0, %v5463_v4 }
 0x19f   :  { %v3702_v32 = vpop.permute.xlu0 %3701 }
 0x1a0   :  { %v3704_v37 = vunpack.i.h.bf16 %v3702_v32  ;;  %v3703_v38 = vunpack.i.l.bf16 %v3702_v32 }
 0x1a1   :  { %3210 = vmatmul.mubr.msk.f32.gmra.mrb[48].mxu1 %vm534_vm2, %v954_v17  ;;  %v1400_v36 = vpop.permute.xlu1 %1399 }
 0x1a2   :  { %3593 = vmatpush3.bf16.xpose.msk.msra.mxu1 %vm4252_vm3, %v3591_v25  ;;  %3212 = vmatprep.mubr.msk.f32.mxu1 %vm3920_vm0, %v5463_v4  ;;  %v3611_v40 = vpack.c.bf16 %v3704_v37, %v3703_v38 }
 0x1a3   :  { %3279 = vmatprep.subr.mxu1 %v5463_v4  ;;  %v1402_v39 = vpop.permute.xlu0 %1401 }
 0x1a5   :  { %3213 = vmatmul.mubr.msk.f32.gmra.mrb[50].mxu1 %vm534_vm2, %v956_v20  ;;  %v3707_v41 = vpop.permute.xlu1 %3706 }
 0x1a6   :  { %3215 = vmatprep.mubr.msk.f32.mxu1 %vm3920_vm0, %v5463_v4  ;;  %v3709_v44 = vunpack.i.h.bf16 %v3707_v41  ;;  %v3708_v45 = vunpack.i.l.bf16 %v3707_v41  ;;  %v4684_v41 = vld [vmem:[%s5459_s11 + $0x38] sm:$0xff] }
 0x1a7   :  { %v1404_v43 = vpop.permute.xlu0 %1403 }
 0x1a8   :  { %v3615_v46 = vpack.c.bf16 %v3709_v44, %v3708_v45 }
 0x1a9   :  { %3216 = vmatmul.mubr.msk.f32.gmra.mrb[52].mxu1 %vm534_vm2, %v958_v23  ;;  %v1406_v48 = vpop.permute.xlu1 %1405  ;;  %v4654_v23 = vld [vmem:[%s5459_s11 + $0x20] sm:$0xff] }
 0x1aa   :  { %3280 = vmatpush3.xpose.msk.msra.mxu1 %vm534_vm2, %v1430_v24  ;;  %3281 = vmatprep.mubr.msk.f32.mxu1 %vm3920_vm0, %v5463_v4 }
 0x1ab   :  { %3606 = vmatprep.subr.bf16.mxu1 %v5465_v0  ;;  %v3712_v47 = vpop.permute.xlu0 %3711 }
 0x1ac   :  { %v3714_v49 = vunpack.i.h.bf16 %v3712_v47  ;;  %v3713_v50 = vunpack.i.l.bf16 %v3712_v47  ;;  %v4694_v47 = vld [vmem:[%s5459_s11 + $0x40] sm:$0x3] }
 0x1ad   :  { %3282 = vmatmul.mubr.msk.f32.vlgmr.msra.gmra.mrb[54].mxu1 %vm534_vm2, %v1396_v27  ;;  %v1408_v52 = vpop.permute.xlu1 %1407 }
 0x1ae   :  { %3609 = vmatpush3.bf16.xpose.msk.msra.mxu1 %vm4252_vm3, %v3607_v34  ;;  %3284 = vmatprep.mubr.msk.f32.mxu1 %vm3920_vm0, %v5463_v4  ;;  %v3619_v51 = vpack.c.bf16 %v3714_v49, %v3713_v50 }
 0x1af   :  { %3610 = vmatprep.subr.bf16.mxu1 %v5465_v0  ;;  %v1410_v53 = vpop.permute.xlu0 %1409 }
 0x1b1   :  { %3285 = vmatmul.mubr.msk.f32.gmra.mrb[56].mxu1 %vm534_vm2, %v1398_v30  ;;  %v1412_v54 = vpop.permute.xlu1 %1411 }
 0x1b2   :  { %3287 = vmatprep.mubr.msk.f32.mxu1 %vm3920_vm0, %v5463_v4 }
 0x1b3   :  { %v1876_v55 = vpop.permute.xlu0 %1875 }
 0x1b5   :  { %3288 = vmatmul.mubr.msk.f32.gmra.mrb[58].mxu1 %vm534_vm2, %v1400_v36  ;;  %v1842_v12 = vpop.permute.xlu1 %1841  ;;  %v4674_v36 = vld [vmem:[%s5459_s11 + $0x30] sm:$0xff]  ;;  %s3925_s11 = smov 16  }
 0x1b6   :  { %3613 = vmatpush3.bf16.xpose.msk.msra.mxu1 %vm4252_vm3, %v3611_v40  ;;  %3290 = vmatprep.mubr.msk.f32.mxu1 %vm3920_vm0, %v5463_v4 }
 0x1b7   :  { %3614 = vmatprep.subr.bf16.mxu1 %v5465_v0  ;;  %v1844_v56 = vpop.permute.xlu0 %1843 }
 0x1b9   :  { %3291 = vmatmul.mubr.msk.f32.gmra.mrb[60].mxu1 %vm534_vm2, %v1402_v39  ;;  %v1846_v57 = vpop.permute.xlu1 %1845 }
 0x1ba   :  { %3293 = vmatprep.mubr.msk.f32.mxu1 %vm3920_vm0, %v5463_v4 }
 0x1bb   :  { %v1848_v58 = vpop.permute.xlu0 %1847 }
 0x1bd   :  { %3294 = vmatmul.mubr.msk.f32.gmra.mrb[62].mxu1 %vm534_vm2, %v1404_v43  ;;  %v1850_v59 = vpop.permute.xlu1 %1849 }
 0x1be   :  { %3617 = vmatpush3.bf16.xpose.msk.msra.mxu1 %vm4252_vm3, %v3615_v46  ;;  %3296 = vmatprep.mubr.msk.f32.mxu1 %vm3920_vm0, %v5463_v4 }
 0x1bf   :  { %3618 = vmatprep.subr.bf16.mxu1 %v5465_v0  ;;  %v1852_v61 = vpop.permute.xlu0 %1851 }
 0x1c1   :  { %3297 = vmatmul.mubr.msk.f32.gmra.mrb[64].mxu1 %vm534_vm2, %v1406_v48  ;;  %v1854_v3 = vpop.permute.xlu1 %1853 }
 0x1c2   :  { %3299 = vmatprep.mubr.msk.f32.mxu1 %vm3920_vm0, %v5463_v4 }
 0x1c3   :  { %v1856_v10 = vpop.permute.xlu0 %1855 }
 0x1c5   :  { %3300 = vmatmul.mubr.msk.f32.gmra.mrb[66].mxu1 %vm534_vm2, %v1408_v52  ;;  %v1858_v17 = vpop.permute.xlu1 %1857 }
 0x1c6   :  { %3621 = vmatpush3.bf16.xpose.msk.msra.mxu1 %vm4252_vm3, %v3619_v51  ;;  %3302 = vmatprep.mubr.msk.f32.mxu1 %vm3920_vm0, %v5463_v4 }
 0x1c7   :  { %3369 = vmatprep.subr.mxu1 %v5463_v4 }
 0x1c9   :  { %3303 = vmatmul.mubr.msk.f32.gmra.mrb[68].mxu1 %vm534_vm2, %v1410_v53 }
 0x1ca   :  { %3305 = vmatprep.mubr.msk.f32.mxu1 %vm3920_vm0, %v5463_v4 }
 0x1cd   :  { %3306 = vmatmul.mubr.msk.f32.gmra.mrb[70].mxu1 %vm534_vm2, %v1412_v54 }
 0x1ce   :  { %3370 = vmatpush3.xpose.msk.msra.mxu1 %vm534_vm2, %v1876_v55  ;;  %3371 = vmatprep.mubr.msk.f32.mxu1 %vm3920_vm0, %v5463_v4 }
 0x1cf   :  { %3634 = vmatprep.subr.bf16.mxu1 %v5465_v0 }
 0x1d1   :  { %3372 = vmatmul.mubr.msk.f32.vlgmr.msra.gmra.mrb[72].mxu1 %vm534_vm2, %v1842_v12 }
 0x1d2   :  { %3374 = vmatprep.mubr.msk.f32.mxu1 %vm3920_vm0, %v5463_v4 }
 0x1d5   :  { %3375 = vmatmul.mubr.msk.f32.gmra.mrb[74].mxu1 %vm534_vm2, %v1844_v56 }
 0x1d6   :  { %3377 = vmatprep.mubr.msk.f32.mxu1 %vm3920_vm0, %v5463_v4 }
 0x1d9   :  { %3378 = vmatmul.mubr.msk.f32.gmra.mrb[76].mxu1 %vm534_vm2, %v1846_v57 }
 0x1da   :  { %3380 = vmatprep.mubr.msk.f32.mxu1 %vm3920_vm0, %v5463_v4 }
 0x1dd   :  { %3381 = vmatmul.mubr.msk.f32.gmra.mrb[78].mxu1 %vm534_vm2, %v1848_v58 }
 0x1de   :  { %3383 = vmatprep.mubr.msk.f32.mxu1 %vm3920_vm0, %v5463_v4 }
 0x1e1   :  { %3384 = vmatmul.mubr.msk.f32.gmra.mrb[80].mxu1 %vm534_vm2, %v1850_v59 }
 0x1e2   :  { %3386 = vmatprep.mubr.msk.f32.mxu1 %vm3920_vm0, %v5463_v4 }
 0x1e5   :  { %v655_v62 = vpop.f32.mrb[18].mxu1  ;;  %3387 = vmatmul.mubr.msk.f32.gmra.mrb[82].mxu1 %vm534_vm2, %v1852_v61 }
 0x1e6   :  { %v4608_v63 = vadd.f32 %v655_v62, %v4604_v60  ;;  %v3103_v1 = vpop.f32.mrb[19].mxu1  ;;  %3389 = vmatprep.mubr.msk.f32.mxu1 %vm3920_vm0, %v5463_v4 }
 0x1e8   :  { %v700_v5 = vsel %vm699_vm5, %v4608_v63, -inf }
 0x1e9   :  { %v660_v6 = vpop.f32.mrb[20].mxu1  ;;  %3390 = vmatmul.mubr.msk.f32.gmra.mrb[84].mxu1 %vm534_vm2, %v1854_v3  ;;  %701 = vmax.xlane.f32.xlu0 %v700_v5 }
 0x1ea   :  { %v4621_v7 = vadd.f32 %v660_v6, %v4615_v2  ;;  %v3106_v8 = vpop.f32.mrb[21].mxu1  ;;  %3392 = vmatprep.mubr.msk.f32.mxu1 %vm3920_vm0, %v5463_v4 }
 0x1ec   :  { %v703_v11 = vsel %vm699_vm5, %v4621_v7, -inf }
 0x1ed   :  { %v665_v13 = vpop.f32.mrb[22].mxu1  ;;  %3393 = vmatmul.mubr.msk.f32.gmra.mrb[86].mxu1 %vm534_vm2, %v1856_v10  ;;  %704 = vmax.xlane.f32.xlu1 %v703_v11 }
 0x1ee   :  { %v4634_v14 = vadd.f32 %v665_v13, %v4628_v9  ;;  %v3109_v15 = vpop.f32.mrb[23].mxu1  ;;  %3395 = vmatprep.mubr.msk.f32.mxu1 %vm3920_vm0, %v5463_v4 }
 0x1f0   :  { %v706_v19 = vsel %vm699_vm5, %v4634_v14, -inf }
 0x1f1   :  { %v670_v20 = vpop.f32.mrb[24].mxu1  ;;  %3396 = vmatmul.mubr.msk.f32.gmra.mrb[88].mxu1 %vm534_vm2, %v1858_v17  ;;  %707 = vmax.xlane.f32.xlu0 %v706_v19 }
 0x1f2   :  { %v4647_v21 = vadd.f32 %v670_v20, %v4641_v16  ;;  %v3112_v22 = vpop.f32.mrb[25].mxu1  ;;  %3459 = vmatprep.mubr.msk.f32.mxu1 %vm3920_vm0, %v5463_v4 }
 0x1f4   :  { %v709_v24 = vsel %vm699_vm5, %v4647_v21, -inf }
 0x1f5   :  { %v675_v25 = vpop.f32.mrb[26].mxu1  ;;  %710 = vmax.xlane.f32.xlu0 %v709_v24 }
 0x1f6   :  { %v4659_v26 = vadd.f32 %v675_v25, %v4654_v23  ;;  %v3115_v27 = vpop.f32.mrb[27].mxu1 }
 0x1f8   :  { %v712_v29 = vsel %vm699_vm5, %v4659_v26, -inf }
 0x1f9   :  { %v680_v30 = vpop.f32.mrb[28].mxu1  ;;  %713 = vmax.xlane.f32.xlu1 %v712_v29 }
 0x1fa   :  { %v4669_v32 = vadd.f32 %v680_v30, %v4664_v28  ;;  %v3118_v34 = vpop.f32.mrb[29].mxu1 }
 0x1fc   :  { %v715_v37 = vsel %vm699_vm5, %v4669_v32, -inf }
 0x1fd   :  { %v685_v38 = vpop.f32.mrb[30].mxu1  ;;  %716 = vmax.xlane.f32.xlu0 %v715_v37 }
 0x1fe   :  { %v4679_v39 = vadd.f32 %v685_v38, %v4674_v36  ;;  %v3121_v40 = vpop.f32.mrb[31].mxu1 }
 0x200   :  { %v718_v43 = vsel %vm699_vm5, %v4679_v39, -inf }
 0x201   :  { %v690_v44 = vpop.f32.mrb[32].mxu1  ;;  %719 = vmax.xlane.f32.xlu1 %v718_v43 }
 0x202   :  { %v4689_v45 = vadd.f32 %v690_v44, %v4684_v41  ;;  %v3124_v46 = vpop.f32.mrb[33].mxu1 }
 0x204   :  { %v721_v48 = vsel %vm699_vm5, %v4689_v45, -inf }
 0x205   :  { %v695_v49 = vpop.f32.mrb[34].mxu1  ;;  %722 = vmax.xlane.f32.xlu0 %v721_v48 }
 0x206   :  { %v4699_v50 = vadd.f32 %v695_v49, %v4694_v47  ;;  %v3127_v51 = vpop.f32.mrb[35].mxu1 }
 0x208   :  { %v725_v52 = vsel %vm724_vm6, %v4699_v50, -inf }
 0x209   :  { %726 = vmax.xlane.f32.xlu1 %v725_v52 }
 0x25c   :  { %v1079_v53 = vpop.f32.mrb[36].mxu1 }
 0x25d   :  { %v4704_v54 = vadd.f32 %v1079_v53, %v4604_v60  ;;  %v3193_v55 = vpop.f32.mrb[37].mxu1 }
 0x25e   :  { %v4748_v55 = vpop.permute.xlu1 %3726 }
 0x25f   :  { %v1123_v12 = vsel %vm699_vm5, %v4704_v54, -inf }
 0x260   :  { %v1084_v56 = vpop.f32.mrb[38].mxu1  ;;  %1124 = vmax.xlane.f32.xlu0 %v1123_v12 }
 0x261   :  { %v4709_v57 = vadd.f32 %v1084_v56, %v4615_v2  ;;  %v3196_v58 = vpop.f32.mrb[39].mxu1 }
 0x263   :  { %v1126_v59 = vsel %vm699_vm5, %v4709_v57, -inf }
 0x264   :  { %v1089_v61 = vpop.f32.mrb[40].mxu1  ;;  %1127 = vmax.xlane.f32.xlu1 %v1126_v59  ;;  %v4750_v59 = vpop.permute.xlu0 %3716 }
 0x265   :  { %v4714_v62 = vadd.f32 %v1089_v61, %v4628_v9  ;;  %v3199_v1 = vpop.f32.mrb[41].mxu1 }
 0x266   :  { %v4754_v1 = vpop.permute.xlu1 %3731 }
 0x267   :  { %v1129_v3 = vsel %vm699_vm5, %v4714_v62, -inf }
 0x268   :  { %v1094_v5 = vpop.f32.mrb[42].mxu1  ;;  %1130 = vmax.xlane.f32.xlu0 %v1129_v3 }
 0x269   :  { %v4719_v6 = vadd.f32 %v1094_v5, %v4641_v16  ;;  %v3202_v8 = vpop.f32.mrb[43].mxu1 }
 0x26a   :  { %v4758_v8 = vpop.permute.xlu1 %3741 }
 0x26b   :  { %v1132_v10 = vsel %vm699_vm5, %v4719_v6, -inf }
 0x26c   :  { %v1099_v11 = vpop.f32.mrb[44].mxu1  ;;  %1133 = vmax.xlane.f32.xlu1 %v1132_v10  ;;  %v4760_v10 = vpop.permute.xlu0 %3721 }
 0x26d   :  { %v4724_v13 = vadd.f32 %v1099_v11, %v4654_v23  ;;  %v3205_v15 = vpop.f32.mrb[45].mxu1 }
 0x26f   :  { %v1135_v17 = vsel %vm699_vm5, %v4724_v13, -inf }
 0x270   :  { %v1104_v19 = vpop.f32.mrb[46].mxu1  ;;  %1136 = vmax.xlane.f32.xlu0 %v1135_v17  ;;  %v4762_v17 = vpop.permute.xlu1 %3746 }
 0x271   :  { %v4729_v20 = vadd.f32 %v1104_v19, %v4664_v28  ;;  %v3208_v22 = vpop.f32.mrb[47].mxu1  ;;  %v4766_v19 = vpop.permute.xlu0 %3736 }
 0x273   :  { %v1138_v24 = vsel %vm699_vm5, %v4729_v20, -inf }
 0x274   :  { %v1109_v25 = vpop.f32.mrb[48].mxu1  ;;  %1139 = vmax.xlane.f32.xlu1 %v1138_v24 }
 0x275   :  { %v4734_v27 = vadd.f32 %v1109_v25, %v4674_v36  ;;  %v3211_v29 = vpop.f32.mrb[49].mxu1  ;;  %v4770_v24 = vpop.permute.xlu0 %3751 }
 0x276   :  { %5470 = vst [vmem:[#allocation2_spill] sm:$0xff] %v4770_v24  ;;  %v4772_v25 = vpop.permute.xlu1 %1246 }
 0x277   :  { %v1141_v30 = vsel %vm699_vm5, %v4734_v27, -inf }
 0x278   :  { %v1114_v34 = vpop.f32.mrb[50].mxu1  ;;  %1142 = vmax.xlane.f32.xlu0 %v1141_v30 }
 0x279   :  { %v4739_v37 = vadd.f32 %v1114_v34, %v4684_v41  ;;  %v3214_v38 = vpop.f32.mrb[51].mxu1  ;;  %v702_v30 = vpop.xlane.xlu0 %701 }
 0x27b   :  { %v1144_v40 = vsel %vm699_vm5, %v4739_v37, -inf }
 0x27c   :  { %v1119_v43 = vpop.f32.mrb[52].mxu1  ;;  %1145 = vmax.xlane.f32.xlu1 %v1144_v40  ;;  %v4778_v40 = vpop.permute.xlu1 %1692 }
 0x27d   :  { %v4744_v44 = vadd.f32 %v1119_v43, %v4694_v47  ;;  %v3217_v46 = vpop.f32.mrb[53].mxu1  ;;  %5471 = vst [vmem:[#allocation3_spill] sm:$0xff] %v4778_v40 }
 0x27f   :  { %v1147_v48 = vsel %vm724_vm6, %v4744_v44, -inf }
 0x280   :  { %v1533_v49 = vpop.f32.mrb[54].mxu1  ;;  %1148 = vmax.xlane.f32.xlu0 %v1147_v48 }
 0x281   :  { %v3283_v51 = vpop.f32.mrb[55].mxu1 }
 0x282   :  { %v705_v51 = vpop.xlane.xlu1 %704 }
 0x284   :  { %v1538_v52 = vpop.f32.mrb[56].mxu1 }
 0x285   :  { %v3286_v53 = vpop.f32.mrb[57].mxu1 }
 0x288   :  { %v1543_v12 = vpop.f32.mrb[58].mxu1 }
 0x289   :  { %v3289_v56 = vpop.f32.mrb[59].mxu1 }
 0x28c   :  { %v1548_v58 = vpop.f32.mrb[60].mxu1 }
 0x28d   :  { %v3292_v61 = vpop.f32.mrb[61].mxu1  ;;  %3761 = vrot.lane.b32.xlu1 %v4404_v18, %s3924_s24 }
 0x28e   :  { %v708_v61 = vpop.xlane.xlu0 %707 }
 0x290   :  { %v1553_v3 = vpop.f32.mrb[62].mxu1 }
 0x291   :  { %v3295_v5 = vpop.f32.mrb[63].mxu1  ;;  %3766 = vrot.lane.b32.xlu1 %v4424_v31, %s3924_s24 }
 0x292   :  { %v729_v5 = vsub.f32 %v4621_v7, %v705_v51  ;;  %v714_v51 = vpop.xlane.xlu1 %713 }
 0x294   :  { %v1558_v11 = vpop.f32.mrb[64].mxu1 }
 0x295   :  { %v3298_v15 = vpop.f32.mrb[65].mxu1 }
 0x296   :  { %3756 = vrot.lane.b32.xlu0 %v4427_v33, %s3924_s24  ;;  %v728_v33 = vsub.f32 %v4608_v63, %v702_v30  ;;  %v4790_v63 = vadd.f32 %v1533_v49, %v4604_v60  ;;  %v711_v30 = vpop.xlane.xlu0 %710 }
 0x297   :  { %v731_v7 = vsub.f32 %v4647_v21, %v711_v30  ;;  %v732_v21 = vsub.f32 %v4659_v26, %v714_v51  ;;  %v4814_v30 = vadd.f32 %v1553_v3, %v4654_v23 }
 0x298   :  { %v4768_v18 = vpop.f32.mrb[66].mxu1  ;;  %v737_v48 = vmul.f32 1.442695, %v728_v33  ;;  %v4793_v33 = vadd.f32 %v1538_v52, %v4615_v2  ;;  %v1577_v49 = vsel %vm699_vm5, %v4790_v63, -inf }
 0x299   :  { %v3301_v22 = vpop.f32.mrb[67].mxu1  ;;  %v745_v26 = vmul.f32 1.442695, %v732_v21  ;;  %v1589_v51 = vsel %vm699_vm5, %v4814_v30, -inf }
 0x29a   :  { %3775 = vpow2.f32 %v737_v48 }
 0x29c   :  { %v4774_v31 = vpop.f32.mrb[68].mxu1 }
 0x29d   :  { %v3304_v29 = vpop.f32.mrb[69].mxu1 }
 0x29e   :  { %v739_v29 = vmul.f32 1.442695, %v729_v5 }
 0x2a0   :  { %v4776_v34 = vpop.f32.mrb[70].mxu1  ;;  %3777 = vpow2.f32 %v739_v29  ;;  %v743_v29 = vmul.f32 1.442695, %v731_v7  ;;  %v4824_v7 = vadd.f32 %v1558_v11, %v4664_v28  ;;  %v4837_v11 = vadd.f32 %v4768_v18, %v4674_v36 }
 0x2a1   :  { %v3307_v38 = vpop.f32.mrb[71].mxu1  ;;  %v4850_v18 = vadd.f32 %v4774_v31, %v4684_v41  ;;  %v4861_v31 = vadd.f32 %v4776_v34, %v4694_v47 }
 0x2a2   :  { %v730_v38 = vsub.f32 %v4634_v14, %v708_v61  ;;  %v1580_v14 = vsel %vm699_vm5, %v4793_v33, -inf }
 0x2a4   :  { %v4781_v43 = vpop.f32.mrb[72].mxu1  ;;  %v741_v48 = vmul.f32 1.442695, %v730_v38  ;;  %v4807_v52 = vpop.eup %3775 }
 0x2a5   :  { %v3373_v46 = vpop.f32.mrb[73].mxu1  ;;  %v717_v38 = vpop.xlane.xlu0 %716 }
 0x2a6   :  { %3779 = vpow2.f32 %v741_v48  ;;  %v720_v48 = vpop.xlane.xlu1 %719 }
 0x2a7   :  { %3781 = vpow2.f32 %v743_v29 }
 0x2a8   :  { %v4783_v53 = vpop.f32.mrb[74].mxu1  ;;  %3783 = vpow2.f32 %v745_v26 }
 0x2a9   :  { %v3376_v56 = vpop.f32.mrb[75].mxu1  ;;  %v723_v21 = vpop.xlane.xlu0 %722 }
 0x2aa   :  { %v4832_v0 = vpop.eup %3777  ;;  %v735_v26 = vsub.f32 %v4689_v45, %v723_v21 }
 0x2ac   :  { %v4786_v15 = vpop.f32.mrb[76].mxu1 }
 0x2ad   :  { %v3379_v22 = vpop.f32.mrb[77].mxu1 }
 0x2ae   :  { %v4799_v22 = vadd.f32 %v1548_v58, %v4641_v16  ;;  %v4811_v58 = vadd.f32 %v1543_v12, %v4628_v9  ;;  %v733_v12 = vsub.f32 %v4669_v32, %v717_v38  ;;  %v734_v32 = vsub.f32 %v4679_v39, %v720_v48 }
 0x2b0   :  { %v4795_v46 = vpop.f32.mrb[78].mxu1  ;;  %v1586_v4 = vsel %vm699_vm5, %v4799_v22, -inf  ;;  %v747_v29 = vmul.f32 1.442695, %v733_v12  ;;  %v749_v39 = vmul.f32 1.442695, %v734_v32  ;;  %v727_v12 = vpop.xlane.xlu1 %726 }
 0x2b1   :  { %v3382_v56 = vpop.f32.mrb[79].mxu1  ;;  %v736_v45 = vsub.f32 %v4699_v50, %v727_v12  ;;  %v1598_v32 = vsel %vm699_vm5, %v4850_v18, -inf  ;;  %v1601_v50 = vsel %vm724_vm6, %v4861_v31, -inf }
 0x2b2   :  { %3785 = vpow2.f32 %v747_v29  ;;  %v751_v29 = vmul.f32 1.442695, %v735_v26  ;;  %v4881_v26 = vadd.f32 %v4783_v53, %v4615_v2 }
 0x2b3   :  { %3787 = vpow2.f32 %v749_v39 }
 0x2b4   :  { %v4801_v5 = vpop.f32.mrb[80].mxu1  ;;  %3789 = vpow2.f32 %v751_v29  ;;  %v4901_v29 = vadd.f32 %v4795_v46, %v4641_v16 }
 0x2b5   :  { %v3385_v61 = vpop.f32.mrb[81].mxu1  ;;  %1581 = vmax.xlane.f32.xlu0 %v1580_v14  ;;  %1578 = vmax.xlane.f32.xlu1 %v1577_v49  ;;  %v755_v14 = vsel %vm699_vm5, %v4807_v52, 0.0 }
 0x2b6   :  { %v1583_v61 = vsel %vm699_vm5, %v4811_v58, -inf  ;;  %v2032_v16 = vsel %vm699_vm5, %v4901_v29, -inf }
 0x2b8   :  { %v4816_v56 = vpop.f32.mrb[82].mxu1 }
 0x2b9   :  { %v3388_v49 = vpop.f32.mrb[83].mxu1  ;;  %1587 = vmax.xlane.f32.xlu0 %v1586_v4  ;;  %756 = vadd.xlane.f32.xlu1 %v755_v14  ;;  %v1592_v14 = vsel %vm699_vm5, %v4824_v7, -inf }
 0x2ba   :  { %v758_v49 = vsel %vm699_vm5, %v4832_v0, 0.0 }
 0x2bc   :  { %v4826_v3 = vpop.f32.mrb[84].mxu1 }
 0x2bd   :  { %v3391_v4 = vpop.f32.mrb[85].mxu1  ;;  %1590 = vmax.xlane.f32.xlu0 %v1589_v51  ;;  %1584 = vmax.xlane.f32.xlu1 %v1583_v61  ;;  %v1595_v61 = vsel %vm699_vm5, %v4837_v11, -inf }
 0x2be   :  { %v4845_v4 = vpop.eup %3779 }
 0x2bf   :  { %v761_v40 = vsel %vm699_vm5, %v4845_v4, 0.0  ;;  %v4856_v24 = vpop.eup %3781 }
 0x2c0   :  { %v4839_v38 = vpop.f32.mrb[86].mxu1  ;;  %v764_v21 = vsel %vm699_vm5, %v4856_v24, 0.0 }
 0x2c1   :  { %v3394_v51 = vpop.f32.mrb[87].mxu1  ;;  %1593 = vmax.xlane.f32.xlu0 %v1592_v14  ;;  %759 = vadd.xlane.f32.xlu1 %v758_v49  ;;  %v4867_v49 = vpop.eup %3783 }
 0x2c2   :  { %v4871_v51 = vadd.f32 %v4781_v43, %v4604_v60  ;;  %v767_v34 = vsel %vm699_vm5, %v4867_v49, 0.0  ;;  %v4877_v39 = vpop.eup %3785 }
 0x2c3   :  { %v770_v60 = vsel %vm699_vm5, %v4877_v39, 0.0  ;;  %v4887_v43 = vpop.eup %3787 }
 0x2c4   :  { %v2019_v48 = vpop.f32.mrb[88].mxu1  ;;  %v2023_v12 = vsel %vm699_vm5, %v4871_v51, -inf  ;;  %v773_v2 = vsel %vm699_vm5, %v4887_v43, 0.0  ;;  %v4897_v53 = vpop.eup %3789 }
 0x2c5   :  { %v3397_v14 = vpop.f32.mrb[89].mxu1  ;;  %1596 = vmax.xlane.f32.xlu0 %v1595_v61  ;;  %762 = vadd.xlane.f32.xlu1 %v761_v40  ;;  %v753_v40 = vmul.f32 1.442695, %v736_v45  ;;  %v4891_v61 = vadd.f32 %v4786_v15, %v4628_v9  ;;  %v776_v9 = vsel %vm699_vm5, %v4897_v53, 0.0 }
 0x2c6   :  { %v2026_v14 = vsel %vm699_vm5, %v4881_v26, -inf }
 0x2c7   :  { %3791 = vpow2.f32 %v753_v40  ;;  %v2029_v45 = vsel %vm699_vm5, %v4891_v61, -inf  ;;  %v4923_v40 = vadd.f32 %v4816_v56, %v4664_v28 }
 0x2c9   :  { %1599 = vmax.xlane.f32.xlu0 %v1598_v32  ;;  %765 = vadd.xlane.f32.xlu1 %v764_v21  ;;  %v4911_v32 = vadd.f32 %v4801_v5, %v4654_v23  ;;  %v4915_v21 = vadd.f32 %v4826_v3, %v4674_v36  ;;  %v4934_v5 = vadd.f32 %v4839_v38, %v4684_v41  ;;  %v2038_v3 = vsel %vm699_vm5, %v4923_v40, -inf }
 0x2cb   :  { %v2035_v23 = vsel %vm699_vm5, %v4911_v32, -inf  ;;  %v2041_v36 = vsel %vm699_vm5, %v4915_v21, -inf }
 0x2cd   :  { %1602 = vmax.xlane.f32.xlu0 %v1601_v50  ;;  %768 = vadd.xlane.f32.xlu1 %v767_v34  ;;  %v4926_v50 = vadd.f32 %v2019_v48, %v4694_v47  ;;  %v2044_v47 = vsel %vm699_vm5, %v4934_v5, -inf }
 0x2cf   :  { %v2047_v28 = vsel %vm724_vm6, %v4926_v50, -inf }
 0x2d1   :  { %2024 = vmax.xlane.f32.xlu0 %v2023_v12  ;;  %771 = vadd.xlane.f32.xlu1 %v770_v60  ;;  %v4907_v15 = vpop.eup %3791 }
 0x2d2   :  { %v779_v46 = vsel %vm724_vm6, %v4907_v15, 0.0 }
 0x2d5   :  { %2027 = vmax.xlane.f32.xlu0 %v2026_v14  ;;  %774 = vadd.xlane.f32.xlu1 %v773_v2 }
 0x2d9   :  { %2030 = vmax.xlane.f32.xlu0 %v2029_v45  ;;  %777 = vadd.xlane.f32.xlu1 %v776_v9 }
 0x2dd   :  { %2033 = vmax.xlane.f32.xlu0 %v2032_v16  ;;  %780 = vadd.xlane.f32.xlu1 %v779_v46 }
 0x2e1   :  { %2036 = vmax.xlane.f32.xlu0 %v2035_v23  ;;  %2042 = vmax.xlane.f32.xlu1 %v2041_v36 }
 0x2e5   :  { %2039 = vmax.xlane.f32.xlu0 %v2038_v3  ;;  %2048 = vmax.xlane.f32.xlu1 %v2047_v28 }
 0x2e9   :  { %2045 = vmax.xlane.f32.xlu0 %v2044_v47 }
 0x2ed   :  { %v1125_v56 = vpop.xlane.xlu0 %1124 }
 0x2ee   :  { %v1150_v48 = vsub.f32 %v4704_v54, %v1125_v56 }
 0x2f0   :  { %v1159_v34 = vmul.f32 1.442695, %v1150_v48 }
 0x2f1   :  { %v1128_v12 = vpop.xlane.xlu1 %1127 }
 0x2f2   :  { %3793 = vpow2.f32 %v1159_v34  ;;  %v1151_v41 = vsub.f32 %v4709_v57, %v1128_v12 }
 0x2f4   :  { %v1161_v38 = vmul.f32 1.442695, %v1151_v41 }
 0x2f5   :  { %v1131_v60 = vpop.xlane.xlu0 %1130 }
 0x2f6   :  { %3795 = vpow2.f32 %v1161_v38  ;;  %v1152_v14 = vsub.f32 %v4714_v62, %v1131_v60 }
 0x2f8   :  { %v1163_v2 = vmul.f32 1.442695, %v1152_v14 }
 0x2f9   :  { %v1134_v45 = vpop.xlane.xlu1 %1133 }
 0x2fa   :  { %3797 = vpow2.f32 %v1163_v2  ;;  %v1153_v9 = vsub.f32 %v4719_v6, %v1134_v45 }
 0x2fc   :  { %v4946_v16 = vpop.eup %3793  ;;  %v1165_v46 = vmul.f32 1.442695, %v1153_v9 }
 0x2fd   :  { %v1137_v23 = vpop.xlane.xlu0 %1136  ;;  %v1177_v54 = vsel %vm699_vm5, %v4946_v16, 0.0 }
 0x2fe   :  { %3799 = vpow2.f32 %v1165_v46  ;;  %v1154_v57 = vsub.f32 %v4724_v13, %v1137_v23  ;;  %1178 = vadd.xlane.f32.xlu1 %v1177_v54 }
 0x300   :  { %v4951_v36 = vpop.eup %3795  ;;  %v1167_v3 = vmul.f32 1.442695, %v1154_v57 }
 0x301   :  { %v1140_v62 = vpop.xlane.xlu1 %1139  ;;  %v1180_v28 = vsel %vm699_vm5, %v4951_v36, 0.0 }
 0x302   :  { %3801 = vpow2.f32 %v1167_v3  ;;  %v1155_v6 = vsub.f32 %v4729_v20, %v1140_v62  ;;  %1181 = vadd.xlane.f32.xlu1 %v1180_v28 }
 0x304   :  { %v4956_v47 = vpop.eup %3797  ;;  %v1169_v56 = vmul.f32 1.442695, %v1155_v6 }
 0x305   :  { %v1143_v48 = vpop.xlane.xlu0 %1142  ;;  %v1183_v34 = vsel %vm699_vm5, %v4956_v47, 0.0 }
 0x306   :  { %3803 = vpow2.f32 %v1169_v56  ;;  %v1156_v13 = vsub.f32 %v4734_v27, %v1143_v48  ;;  %1184 = vadd.xlane.f32.xlu1 %v1183_v34 }
 0x308   :  { %v4961_v12 = vpop.eup %3799  ;;  %v1171_v41 = vmul.f32 1.442695, %v1156_v13 }
 0x309   :  { %v1146_v38 = vpop.xlane.xlu1 %1145  ;;  %v1186_v60 = vsel %vm699_vm5, %v4961_v12, 0.0 }
 0x30a   :  { %3805 = vpow2.f32 %v1171_v41  ;;  %v1157_v20 = vsub.f32 %v4739_v37, %v1146_v38  ;;  %1187 = vadd.xlane.f32.xlu1 %v1186_v60 }
 0x30c   :  { %v4966_v14 = vpop.eup %3801  ;;  %v1173_v2 = vmul.f32 1.442695, %v1157_v20 }
 0x30d   :  { %v1149_v45 = vpop.xlane.xlu0 %1148  ;;  %v1189_v9 = vsel %vm699_vm5, %v4966_v14, 0.0  ;;  %v4987_v6 = vpop.permute.xlu1 %3761 }
 0x30e   :  { %3807 = vpow2.f32 %v1173_v2  ;;  %v1158_v27 = vsub.f32 %v4744_v44, %v1149_v45  ;;  %1190 = vadd.xlane.f32.xlu1 %v1189_v9 }
 0x310   :  { %v4971_v46 = vpop.eup %3803  ;;  %v1175_v23 = vmul.f32 1.442695, %v1158_v27 }
 0x311   :  { %v1192_v54 = vsel %vm699_vm5, %v4971_v46, 0.0  ;;  %v4989_v56 = vpop.permute.xlu0 %3756  ;;  %v4991_v48 = vpop.permute.xlu1 %3766 }
 0x312   :  { %3809 = vpow2.f32 %v1175_v23  ;;  %1193 = vadd.xlane.f32.xlu1 %v1192_v54 }
 0x314   :  { %v4975_v37 = vpop.eup %3805 }
 0x315   :  { %v1195_v57 = vsel %vm699_vm5, %v4975_v37, 0.0 }
 0x316   :  { %1196 = vadd.xlane.f32.xlu0 %v1195_v57 }
 0x318   :  { %v4979_v3 = vpop.eup %3807 }
 0x319   :  { %v1198_v44 = vsel %vm699_vm5, %v4979_v3, 0.0 }
 0x31a   :  { %1199 = vadd.xlane.f32.xlu1 %v1198_v44 }
 0x31c   :  { %v4983_v62 = vpop.eup %3809 }
 0x31d   :  { %v1201_v28 = vsel %vm724_vm6, %v4983_v62, 0.0 }
 0x31e   :  { %1202 = vadd.xlane.f32.xlu0 %v1201_v28 }
 0x342   :  { %v1582_v34 = vpop.xlane.xlu0 %1581  ;;  %v1579_v13 = vpop.xlane.xlu1 %1578 }
 0x343   :  { %v1605_v41 = vsub.f32 %v4793_v33, %v1582_v34  ;;  %v1604_v38 = vsub.f32 %v4790_v63, %v1579_v13 }
 0x345   :  { %v1613_v60 = vmul.f32 1.442695, %v1604_v38  ;;  %v1615_v20 = vmul.f32 1.442695, %v1605_v41  ;;  %v3718_v41 = vunpack.i.l.bf16 %v4750_v59 }
 0x346   :  { %v1588_v2 = vpop.xlane.xlu0 %1587  ;;  %v757_v45 = vpop.xlane.xlu1 %756 }
 0x347   :  { %v1607_v9 = vsub.f32 %v4799_v22, %v1588_v2  ;;  %3811 = vpow2.f32 %v1613_v60  ;;  %v3719_v22 = vunpack.i.h.bf16 %v4750_v59 }
 0x348   :  { %3813 = vrcp.f32 %v757_v45 }
 0x349   :  { %v1619_v27 = vmul.f32 1.442695, %v1607_v9  ;;  %3815 = vpow2.f32 %v1615_v20 }
 0x34a   :  { %v1591_v23 = vpop.xlane.xlu0 %1590  ;;  %v1585_v54 = vpop.xlane.xlu1 %1584 }
 0x34b   :  { %3817 = vpow2.f32 %v1619_v27  ;;  %v1608_v57 = vsub.f32 %v4814_v30, %v1591_v23  ;;  %v1606_v44 = vsub.f32 %v4811_v58, %v1585_v54  ;;  %v3567_v27 = vpack.c.bf16 %v3719_v22, %v3718_v41 }
 0x34c   :  { %v3729_v23 = vunpack.i.h.bf16 %v4748_v55  ;;  %v3728_v54 = vunpack.i.l.bf16 %v4748_v55  ;;  %v5473_v41 = vmov 0.0  }
 0x34d   :  { %v1617_v33 = vmul.f32 1.442695, %v1606_v44  ;;  %v1621_v28 = vmul.f32 1.442695, %v1608_v57 }
 0x34e   :  { %v1594_v63 = vpop.xlane.xlu0 %1593  ;;  %v760_v34 = vpop.xlane.xlu1 %759  ;;  %v3570_v55 = vpack.c.bf16 %v3729_v23, %v3728_v54  ;;  %v3749_v23 = vunpack.i.h.bf16 %v4762_v17  ;;  %v3748_v54 = vunpack.i.l.bf16 %v4762_v17 }
 0x34f   :  { %v1609_v13 = vsub.f32 %v4824_v7, %v1594_v63  ;;  %3819 = vpow2.f32 %v1617_v33  ;;  %v5472_v63 = vmov 0.0|0.0  }
 0x350   :  { %3821 = vrcp.f32 %v760_v34  ;;  %v3739_v34 = vunpack.i.h.bf16 %v4766_v19 }
 0x351   :  { %v1623_v38 = vmul.f32 1.442695, %v1609_v13  ;;  %v5001_v60 = vpop.eup %3811  ;;  %3823 = vpow2.f32 %v1621_v28  ;;  %v3738_v13 = vunpack.i.l.bf16 %v4766_v19 }
 0x352   :  { %v1597_v20 = vpop.xlane.xlu0 %1596  ;;  %v763_v30 = vpop.xlane.xlu1 %762  ;;  %v1631_v45 = vsel %vm699_vm5, %v5001_v60, 0.0 }
 0x353   :  { %v3814_v2 = vpop.eup %3813  ;;  %3825 = vpow2.f32 %v1623_v38  ;;  %v1610_v58 = vsub.f32 %v4837_v11, %v1597_v20  ;;  %1632 = vadd.xlane.f32.xlu0 %v1631_v45 }
 0x354   :  { %v5006_v7 = vpop.eup %3815  ;;  %v791_v9 = vmul.f32 %v3814_v2, %v4807_v52  ;;  %3827 = vrcp.f32 %v763_v30 }
 0x355   :  { %v5009_v59 = vpop.eup %3817  ;;  %v1625_v57 = vmul.f32 1.442695, %v1610_v58  ;;  %v1634_v28 = vsel %vm699_vm5, %v5006_v7, 0.0 }
 0x356   :  { %3147 = vmatmul.mubr.msk.f32.vlgmr.msra.gmra.mrb[36].mxu0 %vm699_vm5, %v791_v9  ;;  %v1600_v11 = vpop.xlane.xlu0 %1599  ;;  %v766_v44 = vpop.xlane.xlu1 %765  ;;  %v1640_v33 = vsel %vm699_vm5, %v5009_v59, 0.0 }
 0x357   :  { %3829 = vpow2.f32 %v1625_v57  ;;  %3568 = vmatpush3.bf16.msra.mxu0 %v3567_v27  ;;  %v1611_v52 = vsub.f32 %v4850_v18, %v1600_v11  ;;  %1641 = vadd.xlane.f32.xlu1 %v1640_v33  ;;  %v3573_v27 = vpack.c.bf16 %v3739_v34, %v3738_v13 }
 0x358   :  { %3831 = vrcp.f32 %v766_v44  ;;  %1635 = vadd.xlane.f32.xlu0 %v1634_v28  ;;  %3569 = vmatprep.subr.bf16.mxu0 %v5472_v63 }
 0x359   :  { %v1627_v22 = vmul.f32 1.442695, %v1611_v52  ;;  %3149 = vmatprep.mubr.msk.f32.mxu0 %vm3920_vm0, %v5473_v41  ;;  %v5024_v38 = vpop.eup %3819 }
 0x35a   :  { %v1603_v18 = vpop.xlane.xlu0 %1602  ;;  %v769_v20 = vpop.xlane.xlu1 %768  ;;  %v1637_v58 = vsel %vm699_vm5, %v5024_v38, 0.0 }
 0x35b   :  { %v3822_v30 = vpop.eup %3821  ;;  %3833 = vpow2.f32 %v1627_v22  ;;  %3571 = vmatpush3.bf16.msra.mxu0 %v3570_v55  ;;  %v1612_v2 = vsub.f32 %v4861_v31, %v1603_v18  ;;  %v3576_v55 = vpack.c.bf16 %v3749_v23, %v3748_v54 }
 0x35c   :  { %v5029_v45 = vpop.eup %3823  ;;  %3835 = vrcp.f32 %v769_v20  ;;  %1638 = vadd.xlane.f32.xlu0 %v1637_v58  ;;  %3572 = vmatprep.subr.bf16.mxu0 %v5472_v63  ;;  %v792_v19 = vmul.f32 %v3822_v30, %v4832_v0 }
 0x35d   :  { %v5033_v9 = vpop.eup %3825  ;;  %v1629_v57 = vmul.f32 1.442695, %v1612_v2  ;;  %v1643_v52 = vsel %vm699_vm5, %v5029_v45, 0.0 }
 0x35e   :  { %v3828_v31 = vpop.eup %3827  ;;  %3150 = vmatmul.mubr.msk.f32.gmra.mrb[38].mxu0 %vm699_vm5, %v792_v19  ;;  %v2025_v11 = vpop.xlane.xlu0 %2024  ;;  %v1646_v33 = vsel %vm699_vm5, %v5033_v9, 0.0 }
 0x35f   :  { %v772_v44 = vpop.xlane.xlu1 %771  ;;  %3837 = vpow2.f32 %v1629_v57  ;;  %3574 = vmatpush3.bf16.msra.mxu0 %v3573_v27  ;;  %v2050_v0 = vsub.f32 %v4871_v51, %v2025_v11  ;;  %1647 = vadd.xlane.f32.xlu1 %v1646_v33  ;;  %v793_v28 = vmul.f32 %v3828_v31, %v4845_v4 }
 0x360   :  { %3839 = vrcp.f32 %v772_v44  ;;  %1644 = vadd.xlane.f32.xlu0 %v1643_v52  ;;  %3152 = vmatprep.mubr.msk.f32.mxu0 %vm3920_vm0, %v5473_v41 }
 0x361   :  { %v5046_v17 = vpop.eup %3829  ;;  %v2059_v34 = vmul.f32 1.442695, %v2050_v0  ;;  %3575 = vmatprep.subr.bf16.mxu0 %v5472_v63 }
 0x362   :  { %v3832_v13 = vpop.eup %3831  ;;  %3153 = vmatmul.mubr.msk.f32.gmra.mrb[40].mxu0 %vm699_vm5, %v793_v28  ;;  %v2028_v51 = vpop.xlane.xlu0 %2027  ;;  %v1649_v18 = vsel %vm699_vm5, %v5046_v17, 0.0 }
 0x363   :  { %v775_v22 = vpop.xlane.xlu1 %774  ;;  %3841 = vpow2.f32 %v2059_v34  ;;  %3577 = vmatpush3.bf16.msra.mxu0 %v3576_v55  ;;  %v2051_v4 = vsub.f32 %v4881_v26, %v2028_v51  ;;  %1650 = vadd.xlane.f32.xlu1 %v1649_v18  ;;  %v794_v20 = vmul.f32 %v3832_v13, %v4856_v24 }
 0x364   :  { %3843 = vrcp.f32 %v775_v22  ;;  %3155 = vmatprep.mubr.msk.f32.mxu0 %vm3920_vm0, %v5473_v41  ;;  %3234 = vmatprep.subr.mxu0 %v5473_v41 }
 0x365   :  { %v5057_v30 = vpop.eup %3833  ;;  %v2061_v2 = vmul.f32 1.442695, %v2051_v4 }
 0x366   :  { %v3836_v58 = vpop.eup %3835  ;;  %3156 = vmatmul.mubr.msk.f32.gmra.mrb[42].mxu0 %vm699_vm5, %v794_v20  ;;  %v2031_v19 = vpop.xlane.xlu0 %2030  ;;  %v1652_v26 = vsel %vm699_vm5, %v5057_v30, 0.0 }
 0x367   :  { %v778_v27 = vpop.xlane.xlu1 %777  ;;  %3845 = vpow2.f32 %v2061_v2  ;;  %3235 = vmatpush3.msk.msra.mxu0 %vm827_vm4, %v4772_v25  ;;  %v2052_v24 = vsub.f32 %v4891_v61, %v2031_v19  ;;  %1653 = vadd.xlane.f32.xlu0 %v1652_v26  ;;  %v795_v23 = vmul.f32 %v3836_v58, %v4867_v49 }
 0x368   :  { %3847 = vrcp.f32 %v778_v27  ;;  %3158 = vmatprep.mubr.msk.f32.mxu0 %vm3920_vm0, %v5473_v41  ;;  %3594 = vmatprep.subr.bf16.mxu0 %v5472_v63 }
 0x369   :  { %v5069_v54 = vpop.eup %3837  ;;  %v2063_v57 = vmul.f32 1.442695, %v2052_v24 }
 0x36a   :  { %v3840_v31 = vpop.eup %3839  ;;  %3159 = vmatmul.mubr.msk.f32.gmra.mrb[44].mxu0 %vm699_vm5, %v795_v23  ;;  %v2034_v11 = vpop.xlane.xlu0 %2033  ;;  %v1655_v25 = vsel %vm724_vm6, %v5069_v54, 0.0 }
 0x36b   :  { %v781_v44 = vpop.xlane.xlu1 %780  ;;  %3849 = vpow2.f32 %v2063_v57  ;;  %v2053_v49 = vsub.f32 %v4901_v29, %v2034_v11  ;;  %1656 = vadd.xlane.f32.xlu1 %v1655_v25  ;;  %3161 = vmatprep.mubr.msk.f32.mxu0 %vm3920_vm0, %v5473_v41  ;;  %v796_v61 = vmul.f32 %v3840_v31, %v4877_v39 }
 0x36c   :  { %3851 = vrcp.f32 %v781_v44 }
 0x36d   :  { %v5078_v33 = vpop.eup %3841  ;;  %v2065_v0 = vmul.f32 1.442695, %v2053_v49 }
 0x36e   :  { %v3844_v52 = vpop.eup %3843  ;;  %3162 = vmatmul.mubr.msk.f32.gmra.mrb[46].mxu0 %vm699_vm5, %v796_v61  ;;  %v2037_v28 = vpop.xlane.xlu0 %2036  ;;  %v2077_v34 = vsel %vm699_vm5, %v5078_v33, 0.0 }
 0x36f   :  { %v2043_v55 = vpop.xlane.xlu1 %2042  ;;  %3853 = vpow2.f32 %v2065_v0  ;;  %v2054_v29 = vsub.f32 %v4911_v32, %v2037_v28  ;;  %2078 = vadd.xlane.f32.xlu0 %v2077_v34  ;;  %3164 = vmatprep.mubr.msk.f32.mxu0 %vm3920_vm0, %v5473_v41  ;;  %v797_v39 = vmul.f32 %v3844_v52, %v4887_v43  ;;  %v3724_v0 = vunpack.i.h.bf16 %v4760_v10 }
 0x370   :  { %v2056_v22 = vsub.f32 %v4915_v21, %v2043_v55  ;;  %v3723_v52 = vunpack.i.l.bf16 %v4760_v10 }
 0x371   :  { %v5087_v13 = vpop.eup %3845  ;;  %v2067_v51 = vmul.f32 1.442695, %v2054_v29 }
 0x372   :  { %v3848_v18 = vpop.eup %3847  ;;  %3165 = vmatmul.mubr.msk.f32.gmra.mrb[48].mxu0 %vm699_vm5, %v797_v39  ;;  %v2040_v4 = vpop.xlane.xlu0 %2039  ;;  %v2080_v20 = vsel %vm699_vm5, %v5087_v13, 0.0  ;;  %v2071_v58 = vmul.f32 1.442695, %v2056_v22  ;;  %v3595_v29 = vpack.c.bf16 %v3724_v0, %v3723_v52  ;;  %v3734_v39 = vunpack.i.h.bf16 %v4754_v1 }
 0x373   :  { %3855 = vpow2.f32 %v2067_v51  ;;  %v2055_v32 = vsub.f32 %v4923_v40, %v2040_v4  ;;  %2081 = vadd.xlane.f32.xlu0 %v2080_v20  ;;  %3167 = vmatprep.mubr.msk.f32.mxu0 %vm3920_vm0, %v5473_v41  ;;  %v798_v43 = vmul.f32 %v3848_v18, %v4897_v53  ;;  %v5124_v44 = vpop.xlane.xlu1 %2048  ;;  %v3733_v51 = vunpack.i.l.bf16 %v4754_v1 }
 0x374   :  { %v3744_v1 = vunpack.i.h.bf16 %v4758_v8  ;;  %v3743_v4 = vunpack.i.l.bf16 %v4758_v8 }
 0x375   :  { %v5097_v2 = vpop.eup %3849  ;;  %v2069_v21 = vmul.f32 1.442695, %v2055_v32  ;;  %v3598_v18 = vpack.c.bf16 %v3734_v39, %v3733_v51 }
 0x376   :  { %v3852_v19 = vpop.eup %3851  ;;  %3168 = vmatmul.mubr.msk.f32.gmra.mrb[50].mxu0 %vm699_vm5, %v798_v43  ;;  %v2083_v27 = vsel %vm699_vm5, %v5097_v2, 0.0  ;;  %v3601_v43 = vpack.c.bf16 %v3744_v1, %v3743_v4  ;;  %v3764_v1 = vunpack.i.h.bf16 %v4987_v6  ;;  %v3763_v4 = vunpack.i.l.bf16 %v4987_v6 }
 0x377   :  { %3857 = vpow2.f32 %v2069_v21  ;;  %2084 = vadd.xlane.f32.xlu0 %v2083_v27  ;;  %3170 = vmatprep.mubr.msk.f32.mxu0 %vm3920_vm0, %v5473_v41  ;;  %v799_v40 = vmul.f32 %v3852_v19, %v4907_v15 }
 0x378   :  { %3859 = vpow2.f32 %v2071_v58  ;;  %v5474_v58 = vld [vmem:[#allocation2_spill] sm:$0xff] }
 0x379   :  { %v5105_v26 = vpop.eup %3853  ;;  %v3754_v21 = vunpack.i.h.bf16 %v5474_v58  ;;  %v3753_v8 = vunpack.i.l.bf16 %v5474_v58 }
 0x37a   :  { %3171 = vmatmul.mubr.msk.f32.gmra.mrb[52].mxu0 %vm699_vm5, %v799_v40  ;;  %v2086_v53 = vsel %vm699_vm5, %v5105_v26, 0.0 }
 0x37b   :  { %2087 = vadd.xlane.f32.xlu1 %v2086_v53  ;;  %3236 = vmatprep.mubr.msk.f32.mxu0 %vm3920_vm0, %v5473_v41 }
 0x37d   :  { %v5112_v24 = vpop.eup %3855 }
 0x37e   :  { %v2089_v23 = vsel %vm699_vm5, %v5112_v24, 0.0 }
 0x37f   :  { %2090 = vadd.xlane.f32.xlu0 %v2089_v23  ;;  %v2058_v23 = vsub.f32 %v4926_v50, %v5124_v44 }
 0x381   :  { %v5116_v57 = vpop.eup %3857 }
 0x382   :  { %v2092_v15 = vsel %vm699_vm5, %v5116_v57, 0.0  ;;  %v5120_v31 = vpop.eup %3859 }
 0x383   :  { %2093 = vadd.xlane.f32.xlu1 %v2092_v15  ;;  %v2095_v11 = vsel %vm699_vm5, %v5120_v31, 0.0 }
 0x387   :  { %2096 = vadd.xlane.f32.xlu1 %v2095_v11 }
 0x38b   :  { %v1179_v25 = vpop.xlane.xlu1 %1178 }
 0x38c   :  { %3861 = vrcp.f32 %v1179_v25  ;;  %v2075_v25 = vmul.f32 1.442695, %v2058_v23 }
 0x38f   :  { %v1182_v49 = vpop.xlane.xlu1 %1181 }
 0x390   :  { %3863 = vrcp.f32 %v1182_v49  ;;  %v5475_v49 = vld [vmem:[#allocation3_spill] sm:$0xff] }
 0x393   :  { %v1185_v61 = vpop.xlane.xlu1 %1184 }
 0x394   :  { %3865 = vrcp.f32 %v1185_v61 }
 0x395   :  { %3771 = vrot.lane.b32.xlu0 %v4434_v35, %s3924_s24  ;;  %v2046_v35 = vpop.xlane.xlu0 %2045 }
 0x396   :  { %v3862_v28 = vpop.eup %3861  ;;  %v2057_v20 = vsub.f32 %v4934_v5, %v2046_v35  ;;  %v3759_v35 = vunpack.i.h.bf16 %v4989_v56 }
 0x397   :  { %v1213_v55 = vmul.f32 %v3862_v28, %v4946_v16  ;;  %v1188_v34 = vpop.xlane.xlu1 %1187 }
 0x398   :  { %3867 = vrcp.f32 %v1188_v34  ;;  %2138 = vrot.lane.b32.xlu1 %v4473_v42, %s3924_s24  ;;  %v2073_v27 = vmul.f32 1.442695, %v2057_v20 }
 0x399   :  { %3237 = vmatmul.mubr.msk.f32.vlgmr.msra.gmra.mrb[54].mxu0 %vm699_vm5, %v1213_v55 }
 0x39a   :  { %v3864_v10 = vpop.eup %3863  ;;  %3596 = vmatpush3.bf16.msra.mxu0 %v3595_v29  ;;  %3239 = vmatprep.mubr.msk.f32.mxu0 %vm3920_vm0, %v5473_v41 }
 0x39b   :  { %v1191_v22 = vpop.xlane.xlu1 %1190  ;;  %3597 = vmatprep.subr.bf16.mxu0 %v5472_v63  ;;  %v1214_v16 = vmul.f32 %v3864_v10, %v4951_v36 }
 0x39c   :  { %3869 = vrcp.f32 %v1191_v22 }
 0x39d   :  { %3240 = vmatmul.mubr.msk.f32.gmra.mrb[56].mxu0 %vm699_vm5, %v1214_v16 }
 0x39e   :  { %v3866_v42 = vpop.eup %3865  ;;  %3599 = vmatpush3.bf16.msra.mxu0 %v3598_v18  ;;  %3242 = vmatprep.mubr.msk.f32.mxu0 %vm3920_vm0, %v5473_v41 }
 0x39f   :  { %v1194_v32 = vpop.xlane.xlu1 %1193  ;;  %3600 = vmatprep.subr.bf16.mxu0 %v5472_v63  ;;  %v1215_v36 = vmul.f32 %v3866_v42, %v4956_v47  ;;  %v3604_v47 = vpack.c.bf16 %v3754_v21, %v3753_v8 }
 0x3a0   :  { %3871 = vrcp.f32 %v1194_v32 }
 0x3a1   :  { %3243 = vmatmul.mubr.msk.f32.gmra.mrb[58].mxu0 %vm699_vm5, %v1215_v36  ;;  %v3769_v36 = vunpack.i.h.bf16 %v4991_v48 }
 0x3a2   :  { %v3868_v19 = vpop.eup %3867  ;;  %3602 = vmatpush3.bf16.msra.mxu0 %v3601_v43  ;;  %3245 = vmatprep.mubr.msk.f32.mxu0 %vm3920_vm0, %v5473_v41  ;;  %v3768_v43 = vunpack.i.l.bf16 %v4991_v48 }
 0x3a3   :  { %v1197_v5 = vpop.xlane.xlu0 %1196  ;;  %3603 = vmatprep.subr.bf16.mxu0 %v5472_v63  ;;  %v1216_v40 = vmul.f32 %v3868_v19, %v4961_v12 }
 0x3a4   :  { %3873 = vrcp.f32 %v1197_v5 }
 0x3a5   :  { %3246 = vmatmul.mubr.msk.f32.gmra.mrb[60].mxu0 %vm699_vm5, %v1216_v40  ;;  %3875 = vpow2.f32 %v2073_v27 }
 0x3a6   :  { %v3870_v53 = vpop.eup %3869  ;;  %3605 = vmatpush3.bf16.msra.mxu0 %v3604_v47  ;;  %3248 = vmatprep.mubr.msk.f32.mxu0 %vm3920_vm0, %v5473_v41 }
 0x3a7   :  { %v1200_v15 = vpop.xlane.xlu1 %1199  ;;  %3324 = vmatprep.subr.mxu0 %v5473_v41  ;;  %v1217_v11 = vmul.f32 %v3870_v53, %v4966_v14 }
 0x3a8   :  { %3877 = vrcp.f32 %v1200_v15 }
 0x3a9   :  { %3249 = vmatmul.mubr.msk.f32.gmra.mrb[62].mxu0 %vm699_vm5, %v1217_v11 }
 0x3aa   :  { %v3872_v12 = vpop.eup %3871  ;;  %3325 = vmatpush3.msk.msra.mxu0 %vm827_vm4, %v5475_v49  ;;  %3251 = vmatprep.mubr.msk.f32.mxu0 %vm3920_vm0, %v5473_v41 }
 0x3ab   :  { %v1203_v50 = vpop.xlane.xlu0 %1202  ;;  %v1218_v44 = vmul.f32 %v3872_v12, %v4971_v46  ;;  %3622 = vmatprep.subr.bf16.mxu0 %v5472_v63 }
 0x3ac   :  { %3879 = vrcp.f32 %v1203_v50 }
 0x3ad   :  { %3252 = vmatmul.mubr.msk.f32.gmra.mrb[64].mxu0 %vm699_vm5, %v1218_v44  ;;  %3881 = vpow2.f32 %v2075_v25 }
 0x3ae   :  { %v3874_v14 = vpop.eup %3873  ;;  %3254 = vmatprep.mubr.msk.f32.mxu0 %vm3920_vm0, %v5473_v41 }
 0x3af   :  { %v1219_v61 = vmul.f32 %v3874_v14, %v4975_v37  ;;  %v5173_v0 = vpop.eup %3875 }
 0x3b0   :  { %v2098_v46 = vsel %vm699_vm5, %v5173_v0, 0.0 }
 0x3b1   :  { %3255 = vmatmul.mubr.msk.f32.gmra.mrb[66].mxu0 %vm699_vm5, %v1219_v61 }
 0x3b2   :  { %v3878_v52 = vpop.eup %3877  ;;  %3257 = vmatprep.mubr.msk.f32.mxu0 %vm3920_vm0, %v5473_v41 }
 0x3b3   :  { %v1220_v28 = vmul.f32 %v3878_v52, %v4979_v3 }
 0x3b4   :  { %2099 = vadd.xlane.f32.xlu0 %v2098_v46 }
 0x3b5   :  { %3258 = vmatmul.mubr.msk.f32.gmra.mrb[68].mxu0 %vm699_vm5, %v1220_v28 }
 0x3b6   :  { %v3880_v55 = vpop.eup %3879  ;;  %3260 = vmatprep.mubr.msk.f32.mxu0 %vm3920_vm0, %v5473_v41 }
 0x3b7   :  { %v1221_v37 = vmul.f32 %v3880_v55, %v4983_v62  ;;  %v5185_v34 = vpop.eup %3881  ;;  %v3758_v62 = vunpack.i.l.bf16 %v4989_v56 }
 0x3b8   :  { %v2101_v29 = vsel %vm724_vm6, %v5185_v34, 0.0 }
 0x3b9   :  { %3261 = vmatmul.mubr.msk.f32.gmra.mrb[70].mxu0 %vm699_vm5, %v1221_v37  ;;  %v3623_v42 = vpack.c.bf16 %v3759_v35, %v3758_v62 }
 0x3ba   :  { %3326 = vmatprep.mubr.msk.f32.mxu0 %vm3920_vm0, %v5473_v41 }
 0x3bc   :  { %2102 = vadd.xlane.f32.xlu1 %v2101_v29 }
 0x3e0   :  { %v1633_v3 = vpop.xlane.xlu0 %1632 }
 0x3e1   :  { %3883 = vrcp.f32 %v1633_v3 }
 0x3e4   :  { %v1642_v51 = vpop.xlane.xlu1 %1641 }
 0x3e5   :  { %v1636_v39 = vpop.xlane.xlu0 %1635 }
 0x3e6   :  { %3885 = vrcp.f32 %v1636_v39 }
 0x3e9   :  { %v1639_v10 = vpop.xlane.xlu0 %1638 }
 0x3ea   :  { %3887 = vrcp.f32 %v1639_v10 }
 0x3eb   :  { %v3884_v22 = vpop.eup %3883  ;;  %3889 = vrcp.f32 %v1642_v51 }
 0x3ec   :  { %v1667_v16 = vmul.f32 %v3884_v22, %v5001_v60  ;;  %v1648_v20 = vpop.xlane.xlu1 %1647  ;;  %v3626_v60 = vpack.c.bf16 %v3764_v1, %v3763_v4 }
 0x3ed   :  { %v1645_v18 = vpop.xlane.xlu0 %1644 }
 0x3ee   :  { %3327 = vmatmul.mubr.msk.f32.vlgmr.msra.gmra.mrb[72].mxu0 %vm699_vm5, %v1667_v16  ;;  %3891 = vrcp.f32 %v1645_v18 }
 0x3ef   :  { %3624 = vmatpush3.bf16.msra.mxu0 %v3623_v42  ;;  %3329 = vmatprep.mubr.msk.f32.mxu0 %vm3920_vm0, %v5473_v41  ;;  %3893 = vrcp.f32 %v1648_v20 }
 0x3f0   :  { %v3886_v32 = vpop.eup %3885  ;;  %3625 = vmatprep.subr.bf16.mxu0 %v5472_v63  ;;  %v1651_v58 = vpop.xlane.xlu1 %1650 }
 0x3f1   :  { %v1668_v56 = vmul.f32 %v3886_v32, %v5006_v7  ;;  %v3629_v7 = vpack.c.bf16 %v3769_v36, %v3768_v43  ;;  %3895 = vrcp.f32 %v1651_v58 }
 0x3f3   :  { %3330 = vmatmul.mubr.msk.f32.gmra.mrb[74].mxu0 %vm699_vm5, %v1668_v56 }
 0x3f4   :  { %v3888_v6 = vpop.eup %3887  ;;  %3627 = vmatpush3.bf16.msra.mxu0 %v3626_v60  ;;  %3332 = vmatprep.mubr.msk.f32.mxu0 %vm3920_vm0, %v5473_v41  ;;  %v1654_v19 = vpop.xlane.xlu0 %1653 }
 0x3f5   :  { %3628 = vmatprep.subr.bf16.mxu0 %v5472_v63  ;;  %v1669_v21 = vmul.f32 %v3888_v6, %v5024_v38  ;;  %v3890_v8 = vpop.eup %3889  ;;  %3897 = vrcp.f32 %v1654_v19 }
 0x3f6   :  { %v1670_v48 = vmul.f32 %v3890_v8, %v5009_v59 }
 0x3f7   :  { %3333 = vmatmul.mubr.msk.f32.gmra.mrb[76].mxu0 %vm699_vm5, %v1669_v21 }
 0x3f8   :  { %3630 = vmatpush3.bf16.msra.mxu0 %v3629_v7  ;;  %3335 = vmatprep.mubr.msk.f32.mxu0 %vm3920_vm0, %v5473_v41  ;;  %v3892_v27 = vpop.eup %3891  ;;  %v1657_v38 = vpop.xlane.xlu1 %1656 }
 0x3f9   :  { %3631 = vmatprep.subr.bf16.mxu0 %v5472_v63  ;;  %v1671_v40 = vmul.f32 %v3892_v27, %v5029_v45  ;;  %v3894_v47 = vpop.eup %3893  ;;  %3899 = vrcp.f32 %v1657_v38 }
 0x3fa   :  { %v1672_v59 = vmul.f32 %v3894_v47, %v5033_v9 }
 0x3fb   :  { %3336 = vmatmul.mubr.msk.f32.gmra.mrb[78].mxu0 %vm699_vm5, %v1670_v48  ;;  %v3896_v53 = vpop.eup %3895 }
 0x3fc   :  { %v2079_v5 = vpop.xlane.xlu0 %2078  ;;  %3338 = vmatprep.mubr.msk.f32.mxu0 %vm3920_vm0, %v5473_v41  ;;  %v1673_v15 = vmul.f32 %v3896_v53, %v5046_v17 }
 0x3fd   :  { %3901 = vrcp.f32 %v2079_v5 }
 0x3ff   :  { %3339 = vmatmul.mubr.msk.f32.gmra.mrb[80].mxu0 %vm699_vm5, %v1671_v40  ;;  %v3898_v11 = vpop.eup %3897 }
 0x400   :  { %3341 = vmatprep.mubr.msk.f32.mxu0 %vm3920_vm0, %v5473_v41  ;;  %v2082_v23 = vpop.xlane.xlu0 %2081  ;;  %v1674_v12 = vmul.f32 %v3898_v11, %v5057_v30 }
 0x401   :  { %3903 = vrcp.f32 %v2082_v23 }
 0x403   :  { %3342 = vmatmul.mubr.msk.f32.gmra.mrb[82].mxu0 %vm699_vm5, %v1672_v59  ;;  %v3900_v25 = vpop.eup %3899 }
 0x404   :  { %3344 = vmatprep.mubr.msk.f32.mxu0 %vm3920_vm0, %v5473_v41  ;;  %v2085_v45 = vpop.xlane.xlu0 %2084  ;;  %v1675_v17 = vmul.f32 %v3900_v25, %v5069_v54 }
 0x405   :  { %3905 = vrcp.f32 %v2085_v45 }
 0x407   :  { %3345 = vmatmul.mubr.msk.f32.gmra.mrb[84].mxu0 %vm699_vm5, %v1673_v15  ;;  %v3902_v46 = vpop.eup %3901 }
 0x408   :  { %3347 = vmatprep.mubr.msk.f32.mxu0 %vm3920_vm0, %v5473_v41  ;;  %v2088_v9 = vpop.xlane.xlu1 %2087  ;;  %v2113_v54 = vmul.f32 %v3902_v46, %v5078_v33  ;;  %v2424_v46 = vld [vmem:[%s5460_s9] sm:$0xff] }
 0x409   :  { %3907 = vrcp.f32 %v2088_v9 }
 0x40b   :  { %3348 = vmatmul.mubr.msk.f32.gmra.mrb[86].mxu0 %vm699_vm5, %v1674_v12  ;;  %v3904_v55 = vpop.eup %3903 }
 0x40c   :  { %v2091_v49 = vpop.xlane.xlu0 %2090  ;;  %3350 = vmatprep.mubr.msk.f32.mxu0 %vm3920_vm0, %v5473_v41  ;;  %v2114_v37 = vmul.f32 %v3904_v55, %v5087_v13 }
 0x40d   :  { %3909 = vrcp.f32 %v2091_v49 }
 0x40f   :  { %3351 = vmatmul.mubr.msk.f32.gmra.mrb[88].mxu0 %vm699_vm5, %v1675_v17  ;;  %v3906_v29 = vpop.eup %3905 }
 0x410   :  { %v3772_v50 = vpop.permute.xlu0 %3771  ;;  %v2094_v44 = vpop.xlane.xlu1 %2093  ;;  %3416 = vmatprep.mubr.msk.f32.mxu0 %vm3920_vm0, %v5473_v41  ;;  %v2115_v33 = vmul.f32 %v3906_v29, %v5097_v2  ;;  %v2427_v29 = vld [vmem:[%s5460_s9 + $0x18] sm:$0xff] }
 0x411   :  { %v3774_v30 = vunpack.i.h.bf16 %v3772_v50  ;;  %v3773_v14 = vunpack.i.l.bf16 %v3772_v50  ;;  %3911 = vrcp.f32 %v2094_v44 }
 0x413   :  { %v3632_v61 = vpack.c.bf16 %v3774_v30, %v3773_v14  ;;  %v3908_v3 = vpop.eup %3907 }
 0x414   :  { %v2097_v52 = vpop.xlane.xlu1 %2096  ;;  %v2116_v39 = vmul.f32 %v3908_v3, %v5105_v26 }
 0x415   :  { %3633 = vmatpush3.bf16.msra.mxu0 %v3632_v61  ;;  %3913 = vrcp.f32 %v2097_v52 }
 0x416   :  { %3414 = vmatprep.subr.mxu0 %v5473_v41 }
 0x417   :  { %v3910_v51 = vpop.eup %3909 }
 0x418   :  { %v2139_v28 = vpop.permute.xlu1 %2138  ;;  %v2117_v13 = vmul.f32 %v3910_v51, %v5112_v24  ;;  %v2429_v51 = vld [vmem:[%s5460_s9 + $0x28] sm:$0xff] }
 0x419   :  { %3415 = vmatpush3.msk.msra.mxu0 %vm827_vm4, %v2139_v28  ;;  %v2426_v28 = vld [vmem:[%s5460_s9 + $0x10] sm:$0xff] }
 0x41a   :  { %3417 = vmatmul.mubr.msk.f32.vlgmr.msra.gmra.mrb[90].mxu0 %vm699_vm5, %v2113_v54  ;;  %v2425_v54 = vld [vmem:[%s5460_s9 + $0x8] sm:$0xff] }
 0x41b   :  { %3419 = vmatprep.mubr.msk.f32.mxu0 %vm3920_vm0, %v5473_v41  ;;  %v3912_v10 = vpop.eup %3911 }
 0x41c   :  { %v2118_v62 = vmul.f32 %v3912_v10, %v5116_v57 }
 0x41e   :  { %3420 = vmatmul.mubr.msk.f32.gmra.mrb[92].mxu0 %vm699_vm5, %v2114_v37  ;;  %v3635_v37 = vpack.c.bf16 %v2425_v54, %v2424_v46 }
 0x41f   :  { %3422 = vmatprep.mubr.msk.f32.mxu0 %vm3920_vm0, %v5473_v41  ;;  %v3914_v26 = vpop.eup %3913 }
 0x420   :  { %v2119_v22 = vmul.f32 %v3914_v26, %v5120_v31  ;;  %3636 = vmatpush3.bf16.msra.mxu1 %v3635_v37  ;;  %v2431_v26 = vld [vmem:[%s5460_s9 + $0x38] sm:$0xff] }
 0x421   :  { %3637 = vmatprep.subr.bf16.mxu1 %v5472_v63 }
 0x422   :  { %3423 = vmatmul.mubr.msk.f32.gmra.mrb[94].mxu0 %vm699_vm5, %v2115_v33  ;;  %v3638_v33 = vpack.c.bf16 %v2427_v29, %v2426_v28 }
 0x423   :  { %3425 = vmatprep.mubr.msk.f32.mxu0 %vm3920_vm0, %v5473_v41 }
 0x424   :  { %3639 = vmatpush3.bf16.msra.mxu1 %v3638_v33 }
 0x425   :  { %3640 = vmatprep.subr.bf16.mxu1 %v5472_v63 }
 0x426   :  { %3426 = vmatmul.mubr.msk.f32.gmra.mrb[96].mxu0 %vm699_vm5, %v2116_v39  ;;  %v2428_v39 = vld [vmem:[%s5460_s9 + $0x20] sm:$0xff] }
 0x427   :  { %3428 = vmatprep.mubr.msk.f32.mxu0 %vm3920_vm0, %v5473_v41  ;;  %v3641_v10 = vpack.c.bf16 %v2429_v51, %v2428_v39 }
 0x429   :  { %v5256_v35 = vpop.f32.mrb[36].mxu0  ;;  %3642 = vmatpush3.bf16.msra.mxu1 %v3641_v10 }
 0x42a   :  { %v3148_v2 = vpop.f32.mrb[37].mxu0  ;;  %3429 = vmatmul.mubr.msk.f32.gmra.mrb[98].mxu0 %vm699_vm5, %v2117_v13  ;;  %3643 = vmatprep.subr.bf16.mxu1 %v5472_v63 }
 0x42b   :  { %3431 = vmatprep.mubr.msk.f32.mxu0 %vm3920_vm0, %v5473_v41 }
 0x42e   :  { %3432 = vmatmul.mubr.msk.f32.gmra.mrb[100].mxu0 %vm699_vm5, %v2118_v62  ;;  %v2430_v62 = vld [vmem:[%s5460_s9 + $0x30] sm:$0xff]  ;;  %s3927_s9 = smov 48  }
 0x42f   :  { %3434 = vmatprep.mubr.msk.f32.mxu0 %vm3920_vm0, %v5473_v41 }
 0x431   :  { %v5266_v24 = vpop.f32.mrb[38].mxu0 }
 0x432   :  { %v3151_v16 = vpop.f32.mrb[39].mxu0  ;;  %3435 = vmatmul.mubr.msk.f32.gmra.mrb[102].mxu0 %vm699_vm5, %v2119_v22 }
 0x433   :  { %3437 = vmatprep.mubr.msk.f32.mxu0 %vm3920_vm0, %v5473_v41  ;;  %v3644_v16 = vpack.c.bf16 %v2431_v26, %v2430_v62 }
 0x435   :  { %v5271_v18 = vpop.f32.mrb[40].mxu0  ;;  %3645 = vmatpush3.bf16.msra.mxu1 %v3644_v16 }
 0x436   :  { %v3154_v1 = vpop.f32.mrb[41].mxu0 }
 0x439   :  { %v5273_v57 = vpop.f32.mrb[42].mxu0 }
 0x43a   :  { %v3157_v4 = vpop.f32.mrb[43].mxu0 }
 0x43d   :  { %v5275_v42 = vpop.f32.mrb[44].mxu0 }
 0x43e   :  { %v3160_v20 = vpop.f32.mrb[45].mxu0 }
 0x441   :  { %v5277_v32 = vpop.f32.mrb[46].mxu0  ;;  %v2100_v31 = vpop.xlane.xlu0 %2099 }
 0x442   :  { %v3163_v56 = vpop.f32.mrb[47].mxu0  ;;  %3915 = vrcp.f32 %v2100_v31 }
 0x445   :  { %v5279_v60 = vpop.f32.mrb[48].mxu0 }
 0x446   :  { %v3166_v36 = vpop.f32.mrb[49].mxu0 }
 0x449   :  { %v5281_v43 = vpop.f32.mrb[50].mxu0  ;;  %v2103_v6 = vpop.xlane.xlu1 %2102 }
 0x44a   :  { %v3169_v58 = vpop.f32.mrb[51].mxu0  ;;  %3917 = vrcp.f32 %v2103_v6 }
 0x44c   :  { %v3916_v21 = vpop.eup %3915 }
 0x44d   :  { %v5283_v8 = vpop.f32.mrb[52].mxu0  ;;  %v2120_v7 = vmul.f32 %v3916_v21, %v5173_v0 }
 0x44e   :  { %v3172_v19 = vpop.f32.mrb[53].mxu0 }
 0x44f   :  { %3438 = vmatmul.mubr.msk.f32.gmra.mrb[104].mxu0 %vm699_vm5, %v2120_v7 }
 0x450   :  { %3440 = vmatprep.mubr.msk.f32.mxu0 %vm3920_vm0, %v5473_v41 }
 0x454   :  { %v3918_v48 = vpop.eup %3917 }
 0x455   :  { %v2121_v27 = vmul.f32 %v3918_v48, %v5185_v34 }
 0x457   :  { %3441 = vmatmul.mubr.msk.f32.gmra.mrb[106].mxu0 %vm699_vm5, %v2121_v27 }
 0x46c   :  { %v1351_v5 = vpop.f32.mrb[54].mxu0 }
 0x46d   :  { %2296 = vrot.lane.b32.xlu0 %v1351_v5, %s3925_s11  ;;  %v3238_v38 = vpop.f32.mrb[55].mxu0 }
 0x470   :  { %v1356_v40 = vpop.f32.mrb[56].mxu0 }
 0x471   :  { %2298 = vrot.lane.b32.xlu0 %v1356_v40, %s3925_s11  ;;  %v3241_v0 = vpop.f32.mrb[57].mxu0 }
 0x474   :  { %v1361_v47 = vpop.f32.mrb[58].mxu0 }
 0x475   :  { %2300 = vrot.lane.b32.xlu1 %v1361_v47, %s3925_s11  ;;  %v3244_v59 = vpop.f32.mrb[59].mxu0 }
 0x478   :  { %v1366_v53 = vpop.f32.mrb[60].mxu0 }
 0x479   :  { %2302 = vrot.lane.b32.xlu0 %v1366_v53, %s3925_s11  ;;  %v3247_v23 = vpop.f32.mrb[61].mxu0 }
 0x47c   :  { %v1371_v34 = vpop.f32.mrb[62].mxu0 }
 0x47d   :  { %2304 = vrot.lane.b32.xlu1 %v1371_v34, %s3925_s11  ;;  %v3250_v15 = vpop.f32.mrb[63].mxu0 }
 0x480   :  { %v1376_v11 = vpop.f32.mrb[64].mxu0 }
 0x481   :  { %v3253_v45 = vpop.f32.mrb[65].mxu0 }
 0x484   :  { %v1381_v12 = vpop.f32.mrb[66].mxu0 }
 0x485   :  { %v3256_v25 = vpop.f32.mrb[67].mxu0 }
 0x488   :  { %v5296_v9 = vpop.f32.mrb[68].mxu0 }
 0x489   :  { %v3259_v49 = vpop.f32.mrb[69].mxu0 }
 0x48c   :  { %v5298_v17 = vpop.f32.mrb[70].mxu0 }
 0x48d   :  { %v3262_v50 = vpop.f32.mrb[71].mxu0 }
 0x4c1   :  { %v1797_v44 = vpop.f32.mrb[72].mxu0 }
 0x4c2   :  { %2332 = vrot.lane.b32.xlu1 %v1797_v44, %s3926_s3  ;;  %v3328_v30 = vpop.f32.mrb[73].mxu0 }
 0x4c6   :  { %v1802_v14 = vpop.f32.mrb[74].mxu0 }
 0x4c7   :  { %2334 = vrot.lane.b32.xlu0 %v1802_v14, %s3926_s3  ;;  %v3331_v61 = vpop.f32.mrb[75].mxu0 }
 0x4ca   :  { %v1807_v52 = vpop.f32.mrb[76].mxu0 }
 0x4cb   :  { %2336 = vrot.lane.b32.xlu0 %v1807_v52, %s3926_s3  ;;  %v3334_v55 = vpop.f32.mrb[77].mxu0 }
 0x4ce   :  { %v1812_v3 = vpop.f32.mrb[78].mxu0 }
 0x4cf   :  { %2338 = vrot.lane.b32.xlu1 %v1812_v3, %s3926_s3  ;;  %v3337_v13 = vpop.f32.mrb[79].mxu0 }
 0x4d2   :  { %v1817_v2 = vpop.f32.mrb[80].mxu0 }
 0x4d3   :  { %2340 = vrot.lane.b32.xlu0 %v1817_v2, %s3926_s3  ;;  %v3340_v22 = vpop.f32.mrb[81].mxu0 }
 0x4d6   :  { %v1822_v1 = vpop.f32.mrb[82].mxu0 }
 0x4d7   :  { %2342 = vrot.lane.b32.xlu1 %v1822_v1, %s3926_s3  ;;  %v3343_v4 = vpop.f32.mrb[83].mxu0 }
 0x4da   :  { %v1827_v20 = vpop.f32.mrb[84].mxu0 }
 0x4db   :  { %v3346_v31 = vpop.f32.mrb[85].mxu0 }
 0x4de   :  { %v1832_v56 = vpop.f32.mrb[86].mxu0 }
 0x4df   :  { %v3349_v36 = vpop.f32.mrb[87].mxu0 }
 0x4e2   :  { %v1837_v6 = vpop.f32.mrb[88].mxu0 }
 0x4e3   :  { %v3352_v58 = vpop.f32.mrb[89].mxu0 }
 0x4e7   :  { %v2301_v50 = vpop.permute.xlu1 %2300 }
 0x4e8   :  { %v2397_v3 = vsel %vm534_vm2, %v5271_v18, %v2301_v50 }
 0x4ed   :  { %v2243_v21 = vpop.f32.mrb[90].mxu0 }
 0x4ee   :  { %2368 = vrot.lane.b32.xlu0 %v2243_v21, %s3927_s9  ;;  %v3418_v7 = vpop.f32.mrb[91].mxu0 }
 0x4ef   :  { %v2305_v44 = vpop.permute.xlu1 %2304 }
 0x4f0   :  { %v2399_v22 = vsel %vm534_vm2, %v5275_v42, %v2305_v44 }
 0x4f1   :  { %v2248_v19 = vpop.f32.mrb[92].mxu0 }
 0x4f2   :  { %2370 = vrot.lane.b32.xlu0 %v2248_v19, %s3927_s9  ;;  %v3421_v48 = vpop.f32.mrb[93].mxu0 }
 0x4f5   :  { %v2253_v63 = vpop.f32.mrb[94].mxu0 }
 0x4f6   :  { %2306 = vrot.lane.b32.xlu0 %v1376_v11, %s3925_s11  ;;  %2372 = vrot.lane.b32.xlu1 %v2253_v63, %s3927_s9  ;;  %v3424_v27 = vpop.f32.mrb[95].mxu0 }
 0x4f9   :  { %v2258_v5 = vpop.f32.mrb[96].mxu0 }
 0x4fa   :  { %2308 = vrot.lane.b32.xlu1 %v1381_v12, %s3925_s11  ;;  %2374 = vrot.lane.b32.xlu0 %v2258_v5, %s3927_s9  ;;  %v3427_v38 = vpop.f32.mrb[97].mxu0  ;;  %v2297_v12 = vpop.permute.xlu0 %2296 }
 0x4fd   :  { %v2263_v40 = vpop.f32.mrb[98].mxu0 }
 0x4fe   :  { %2344 = vrot.lane.b32.xlu0 %v1827_v20, %s3926_s3  ;;  %2376 = vrot.lane.b32.xlu1 %v2263_v40, %s3927_s9  ;;  %v3430_v0 = vpop.f32.mrb[99].mxu0  ;;  %v2299_v25 = vpop.permute.xlu0 %2298 }
 0x4ff   :  { %v2396_v55 = vsel %vm534_vm2, %v5266_v24, %v2299_v25 }
 0x501   :  { %v2268_v47 = vpop.f32.mrb[100].mxu0 }
 0x502   :  { %2346 = vrot.lane.b32.xlu1 %v1832_v56, %s3926_s3  ;;  %2378 = vrot.lane.b32.xlu0 %v2268_v47, %s3927_s9  ;;  %v3433_v59 = vpop.f32.mrb[101].mxu0  ;;  %v2303_v49 = vpop.permute.xlu0 %2302  ;;  %v2732_v47 = vld [vmem:[%s5461_s10] ss:$0 sm:$0xff] }
 0x503   :  { %v2398_v10 = vsel %vm534_vm2, %v5273_v57, %v2303_v49 }
 0x505   :  { %v2273_v53 = vpop.f32.mrb[102].mxu0 }
 0x506   :  { %2310 = vrot.lane.b32.xlu0 %v5296_v9, %s3925_s11  ;;  %2380 = vrot.lane.b32.xlu1 %v2273_v53, %s3927_s9  ;;  %v3436_v23 = vpop.f32.mrb[103].mxu0 }
 0x50a   :  { %2312 = vrot.lane.b32.xlu1 %v5298_v17, %s3925_s11  ;;  %v2395_v17 = vsel %vm534_vm2, %v5256_v35, %v2297_v12 }
 0x522   :  { %v2278_v34 = vpop.f32.mrb[104].mxu0 }
 0x523   :  { %2382 = vrot.lane.b32.xlu0 %v2278_v34, %s3927_s9  ;;  %v3439_v15 = vpop.f32.mrb[105].mxu0 }
 0x527   :  { %2348 = vrot.lane.b32.xlu0 %v1837_v6, %s3926_s3 }
 0x52a   :  { %v2283_v11 = vpop.f32.mrb[106].mxu0 }
 0x52b   :  { %2384 = vrot.lane.b32.xlu1 %v2283_v11, %s3927_s9  ;;  %v3442_v45 = vpop.f32.mrb[107].mxu0 }
 0x534   :  { %v2333_v14 = vpop.permute.xlu1 %2332 }
 0x535   :  { %v2405_v52 = vsel %vm2404_vm7, %v2395_v17, %v2333_v14 }
 0x539   :  { %v2335_v9 = vpop.permute.xlu0 %2334 }
 0x53a   :  { %v2406_v37 = vsel %vm2404_vm7, %v2396_v55, %v2335_v9 }
 0x53d   :  { %v2337_v30 = vpop.permute.xlu0 %2336 }
 0x53e   :  { %v2407_v39 = vsel %vm2404_vm7, %v2397_v3, %v2337_v30 }
 0x541   :  { %v2339_v46 = vpop.permute.xlu1 %2338 }
 0x542   :  { %v2408_v2 = vsel %vm2404_vm7, %v2398_v10, %v2339_v46 }
 0x545   :  { %v2341_v61 = vpop.permute.xlu0 %2340 }
 0x546   :  { %v2409_v16 = vsel %vm2404_vm7, %v2399_v22, %v2341_v61 }
 0x549   :  { %v2343_v29 = vpop.permute.xlu1 %2342 }
 0x560   :  { %v2369_v54 = vpop.permute.xlu0 %2368 }
 0x561   :  { %v2415_v28 = vsel %vm2414_vm8, %v2405_v52, %v2369_v54 }
 0x562   :  { %3460 = vmatmul.mubr.msk.f32.vlgmr.msra.gmra.mrb[90].mxu1 %vm83_vm1, %v2415_v28 }
 0x563   :  { %3462 = vmatprep.mubr.msk.f32.mxu1 %vm3920_vm0, %v5473_v41 }
 0x564   :  { %v2371_v33 = vpop.permute.xlu0 %2370 }
 0x565   :  { %v2416_v35 = vsel %vm2414_vm8, %v2406_v37, %v2371_v33 }
 0x566   :  { %3463 = vmatmul.mubr.msk.f32.gmra.mrb[92].mxu1 %vm83_vm1, %v2416_v35 }
 0x567   :  { %3465 = vmatprep.mubr.msk.f32.mxu1 %vm3920_vm0, %v5473_v41 }
 0x568   :  { %v2307_v24 = vpop.permute.xlu0 %2306  ;;  %v2373_v51 = vpop.permute.xlu1 %2372 }
 0x569   :  { %v2417_v13 = vsel %vm2414_vm8, %v2407_v39, %v2373_v51  ;;  %v2400_v4 = vsel %vm534_vm2, %v5277_v32, %v2307_v24 }
 0x56a   :  { %3466 = vmatmul.mubr.msk.f32.gmra.mrb[94].mxu1 %vm83_vm1, %v2417_v13  ;;  %v2410_v42 = vsel %vm2404_vm7, %v2400_v4, %v2343_v29 }
 0x56b   :  { %3468 = vmatprep.mubr.msk.f32.mxu1 %vm3920_vm0, %v5473_v41 }
 0x56c   :  { %v2309_v18 = vpop.permute.xlu1 %2308  ;;  %v2375_v62 = vpop.permute.xlu0 %2374 }
 0x56d   :  { %v2418_v26 = vsel %vm2414_vm8, %v2408_v2, %v2375_v62  ;;  %v2401_v6 = vsel %vm534_vm2, %v5279_v60, %v2309_v18 }
 0x56e   :  { %3469 = vmatmul.mubr.msk.f32.gmra.mrb[96].mxu1 %vm83_vm1, %v2418_v26 }
 0x56f   :  { %3471 = vmatprep.mubr.msk.f32.mxu1 %vm3920_vm0, %v5473_v41 }
 0x570   :  { %v2345_v57 = vpop.permute.xlu0 %2344  ;;  %v2377_v1 = vpop.permute.xlu1 %2376 }
 0x571   :  { %v2419_v20 = vsel %vm2414_vm8, %v2409_v16, %v2377_v1  ;;  %v2411_v32 = vsel %vm2404_vm7, %v2401_v6, %v2345_v57 }
 0x572   :  { %3472 = vmatmul.mubr.msk.f32.gmra.mrb[98].mxu1 %vm83_vm1, %v2419_v20 }
 0x573   :  { %3474 = vmatprep.mubr.msk.f32.mxu1 %vm3920_vm0, %v5473_v41 }
 0x574   :  { %v2347_v31 = vpop.permute.xlu1 %2346  ;;  %v2379_v56 = vpop.permute.xlu0 %2378 }
 0x575   :  { %v2420_v36 = vsel %vm2414_vm8, %v2410_v42, %v2379_v56 }
 0x576   :  { %3475 = vmatmul.mubr.msk.f32.gmra.mrb[100].mxu1 %vm83_vm1, %v2420_v36 }
 0x577   :  { %3477 = vmatprep.mubr.msk.f32.mxu1 %vm3920_vm0, %v5473_v41 }
 0x578   :  { %v2381_v58 = vpop.permute.xlu1 %2380  ;;  %v2311_v7 = vpop.permute.xlu0 %2310 }
 0x579   :  { %v2421_v21 = vsel %vm2414_vm8, %v2411_v32, %v2381_v58  ;;  %v2402_v19 = vsel %vm534_vm2, %v5281_v43, %v2311_v7 }
 0x57a   :  { %3478 = vmatmul.mubr.msk.f32.gmra.mrb[102].mxu1 %vm83_vm1, %v2421_v21  ;;  %v2412_v48 = vsel %vm2404_vm7, %v2402_v19, %v2347_v31 }
 0x57b   :  { %3480 = vmatprep.mubr.msk.f32.mxu1 %vm3920_vm0, %v5473_v41 }
 0x57c   :  { %v2313_v27 = vpop.permute.xlu1 %2312 }
 0x57d   :  { %v2403_v38 = vsel %vm534_vm2, %v5283_v8, %v2313_v27 }
 0x595   :  { %v2383_v60 = vpop.permute.xlu0 %2382 }
 0x596   :  { %v2422_v63 = vsel %vm2414_vm8, %v2412_v48, %v2383_v60 }
 0x597   :  { %3481 = vmatmul.mubr.msk.f32.gmra.mrb[104].mxu1 %vm83_vm1, %v2422_v63 }
 0x598   :  { %3483 = vmatprep.mubr.msk.f32.mxu1 %vm3920_vm0, %v5473_v41 }
 0x599   :  { %v2349_v5 = vpop.permute.xlu0 %2348 }
 0x59a   :  { %v2413_v40 = vsel %vm2404_vm7, %v2403_v38, %v2349_v5 }
 0x59d   :  { %v2385_v0 = vpop.permute.xlu1 %2384 }
 0x59e   :  { %v2423_v43 = vsel %vm2414_vm8, %v2413_v40, %v2385_v0 }
 0x59f   :  { %3484 = vmatmul.mubr.msk.f32.gmra.mrb[106].mxu1 %vm83_vm1, %v2423_v43 }
 0x635   :  { %v2532_v59 = vpop.f32.mrb[90].mxu1 }
 0x636   :  { %v2533_v53 = vadd.f32 %v2732_v47, %v2532_v59  ;;  %v3461_v23 = vpop.f32.mrb[91].mxu1 }
 0x638   :  { %2576 = vst.msk [vmem:[%s5462_s12] sm:$0xff] %vm83_vm1, %v2533_v53 }
 0x639   :  { %v2537_v41 = vpop.f32.mrb[92].mxu1 }
 0x63a   :  { %v2538_v8 = vadd.f32 %v2732_v47, %v2537_v41  ;;  %v3464_v34 = vpop.f32.mrb[93].mxu1 }
 0x63c   :  { %2577 = vst.msk [vmem:[%s5462_s12 + $0x8] sm:$0xff] %vm83_vm1, %v2538_v8 }
 0x63d   :  { %v2542_v15 = vpop.f32.mrb[94].mxu1 }
 0x63e   :  { %v2543_v11 = vadd.f32 %v2732_v47, %v2542_v15  ;;  %v3467_v45 = vpop.f32.mrb[95].mxu1 }
 0x640   :  { %2578 = vst.msk [vmem:[%s5462_s12 + $0x10] sm:$0xff] %vm83_vm1, %v2543_v11 }
 0x641   :  { %v2547_v12 = vpop.f32.mrb[96].mxu1 }
 0x642   :  { %v2548_v25 = vadd.f32 %v2732_v47, %v2547_v12  ;;  %v3470_v49 = vpop.f32.mrb[97].mxu1 }
 0x644   :  { %2579 = vst.msk [vmem:[%s5462_s12 + $0x18] sm:$0xff] %vm83_vm1, %v2548_v25 }
 0x645   :  { %v2552_v9 = vpop.f32.mrb[98].mxu1 }
 0x646   :  { %v2553_v50 = vadd.f32 %v2732_v47, %v2552_v9  ;;  %v3473_v44 = vpop.f32.mrb[99].mxu1 }
 0x648   :  { %2580 = vst.msk [vmem:[%s5462_s12 + $0x20] sm:$0xff] %vm83_vm1, %v2553_v50 }
 0x649   :  { %v2557_v30 = vpop.f32.mrb[100].mxu1 }
 0x64a   :  { %v2558_v14 = vadd.f32 %v2732_v47, %v2557_v30  ;;  %v3476_v61 = vpop.f32.mrb[101].mxu1 }
 0x64c   :  { %2581 = vst.msk [vmem:[%s5462_s12 + $0x28] sm:$0xff] %vm83_vm1, %v2558_v14 }
 0x64d   :  { %v2562_v17 = vpop.f32.mrb[102].mxu1 }
 0x64e   :  { %v2563_v52 = vadd.f32 %v2732_v47, %v2562_v17  ;;  %v3479_v46 = vpop.f32.mrb[103].mxu1 }
 0x650   :  { %2582 = vst.msk [vmem:[%s5462_s12 + $0x30] sm:$0xff] %vm83_vm1, %v2563_v52 }
 0x66a   :  { %v2567_v54 = vpop.f32.mrb[104].mxu1 }
 0x66b   :  { %v2568_v28 = vadd.f32 %v2732_v47, %v2567_v54  ;;  %v3482_v55 = vpop.f32.mrb[105].mxu1 }
 0x66d   :  { %2583 = vst.msk [vmem:[%s5462_s12 + $0x38] sm:$0xff] %vm83_vm1, %v2568_v28 }
 0x672   :  { %v2572_v37 = vpop.f32.mrb[106].mxu1 }
 0x673   :  { %v2573_v29 = vadd.f32 %v2732_v47, %v2572_v37  ;;  %v3485_v33 = vpop.f32.mrb[107].mxu1 }
 0x675   :  { %2585 = vst.msk [vmem:[%s5462_s12 + $0x40] sm:$0x3] %vm2584_vm9, %v2573_v29 }

</bundles_post_ra>
